<compile_context>
chip_gen: v5e
topology: v5e:2x2
jax: 0.10.0
libtpu: 0.0.40
codegen_flags: <defaults>
</compile_context>

<pallas_src>
import functools

import jax
import jax.numpy as jnp
from jax.experimental import pallas as pl
from jax.experimental.pallas import tpu as pltpu


# ----------------------------------------------------------------------------
# Kernel 1: fused 3x3 conv + bias + ReLU + global spatial-SUM pool
# ----------------------------------------------------------------------------
def conv_pool_sum_kernel(x_ref, w_ref, b_ref, o_ref, *, tr, width):
    # x_ref: (1, H+2, W+2, Cin)  bf16  padded image for batch n (resident across co, r)
    # w_ref: (3, 3, Cin, TCO)    bf16  weight tile (weight-stationary across n, r)
    # b_ref: (1, TCO)            f32
    # o_ref: (1, 1, TCO)         f32   pooled channel sums, resident across r
    r = pl.program_id(2)

    @pl.when(r == 0)
    def _init():
        o_ref[...] = jnp.zeros_like(o_ref)

    cin = x_ref.shape[-1]
    tco = o_ref.shape[-1]
    h0 = r * tr  # first output row of this row tile

    acc = jnp.zeros((tr * width, tco), jnp.float32)
    # 9 conv taps as 9 accumulated matmuls over shifted slabs (no im2col).
    for dh in range(3):
        for dw in range(3):
            slab = x_ref[0, pl.ds(h0 + dh, tr), pl.ds(dw, width), :]
            slab2d = slab.reshape(tr * width, cin)
            acc = acc + jnp.dot(slab2d, w_ref[dh, dw],
                                preferred_element_type=jnp.float32)

    bias = b_ref[0, :]
    act = jnp.maximum(acc + bias[None, :], 0.0)             # f32 epilogue
    o_ref[...] += jnp.sum(act, axis=0).reshape(1, 1, tco)   # partial pooled sum


def conv_pool_sum(x_nhwc, conv_w, conv_b, *, tr=8, tco=128):
    """3x3 'same' conv + bias + ReLU + spatial SUM pool. Returns (N, Cout) f32."""
    N, H, W, Cin = x_nhwc.shape
    Cout = conv_w.shape[-1]
    assert H % tr == 0, (H, tr)
    assert Cout % tco == 0, (Cout, tco)

    xp = jnp.pad(x_nhwc, ((0, 0), (1, 1), (1, 1), (0, 0))).astype(jnp.bfloat16)
    w = conv_w.astype(jnp.bfloat16)                          # (3, 3, Cin, Cout)
    b = conv_b.reshape(1, Cout).astype(jnp.float32)

    grid = (N, Cout // tco, H // tr)                         # reduction (rows) last
    kernel = functools.partial(conv_pool_sum_kernel, tr=tr, width=W)

    out = pl.pallas_call(
        kernel,
        out_shape=jax.ShapeDtypeStruct((N, 1, Cout), jnp.float32),
        grid_spec=pltpu.PrefetchScalarGridSpec(
            num_scalar_prefetch=0,
            grid=grid,
            in_specs=[
                # full padded image for batch n; re-DMAed only when n changes
                pl.BlockSpec((1, H + 2, W + 2, Cin),
                             lambda n, co, r: (n, 0, 0, 0)),
                # weight-stationary: block index constant across n and r
                pl.BlockSpec((3, 3, Cin, tco), lambda n, co, r: (0, 0, 0, co)),
                pl.BlockSpec((1, tco), lambda n, co, r: (0, co)),
            ],
            out_specs=pl.BlockSpec((1, 1, tco), lambda n, co, r: (n, 0, co)),
        ),
        compiler_params=pltpu.CompilerParams(
            dimension_semantics=("parallel", "parallel", "arbitrary"),
            vmem_limit_bytes=32 * 1024 * 1024),
    )(xp, w, b)
    return out.reshape(N, Cout)


# ----------------------------------------------------------------------------
# Kernel 2: mean (sum * 1/(H*W)) + Linear embed, lane-dense (padded) output
# ----------------------------------------------------------------------------
def pool_embed_kernel(p_ref, w_ref, b_ref, o_ref, *, inv_hw):
    # p_ref: (N, C) f32 pooled channel sums; w_ref: (C, TE); b_ref: (1, TE)
    pooled = p_ref[...] * inv_hw                  # mean = sum * precomputed 1/(H*W)
    emb = jnp.dot(pooled, w_ref[...], preferred_element_type=jnp.float32)
    o_ref[...] = (emb + b_ref[...]).astype(o_ref.dtype)


def pool_embed(pooled_sum, hw, embed_w, embed_b, *, te=128):
    N, C = pooled_sum.shape
    E = embed_w.shape[-1]
    e_pad = ((E + te - 1) // te) * te             # lane-dense output width
    w = jnp.zeros((C, e_pad), jnp.float32).at[:, :E].set(embed_w)
    b = jnp.zeros((1, e_pad), jnp.float32).at[0, :E].set(embed_b)
    kernel = functools.partial(pool_embed_kernel, inv_hw=1.0 / float(hw))

    out = pl.pallas_call(
        kernel,
        out_shape=jax.ShapeDtypeStruct((N, e_pad), jnp.float32),
        grid_spec=pltpu.PrefetchScalarGridSpec(
            num_scalar_prefetch=0,
            grid=(e_pad // te,),
            in_specs=[
                pl.BlockSpec((N, C), lambda e: (0, 0)),
                pl.BlockSpec((C, te), lambda e: (0, e)),
                pl.BlockSpec((1, te), lambda e: (0, e)),
            ],
            out_specs=pl.BlockSpec((N, te), lambda e: (0, e)),
        ),
        compiler_params=pltpu.CompilerParams(
            dimension_semantics=("parallel",)),
    )(pooled_sum, w, b)
    return out[:, :E]


# ----------------------------------------------------------------------------
# EncoderCNN forward
# ----------------------------------------------------------------------------
def encoder_cnn_forward(images_nchw, params):
    """images_nchw: (N, C, H, W) f32 (PyTorch layout). Returns (N, embed_size)."""
    x = jnp.transpose(images_nchw, (0, 2, 3, 1))             # NCHW -> NHWC glue
    pooled = conv_pool_sum(x, params["conv_w"], params["conv_b"])
    hw = x.shape[1] * x.shape[2]
    return pool_embed(pooled, hw, params["embed_w"], params["embed_b"])


def init_params(key, in_channels, feat_channels, embed_size):
    k1, k2, k3, k4 = jax.random.split(key, 4)
    conv_w = jax.random.normal(k1, (3, 3, in_channels, feat_channels),
                               jnp.float32) * 0.1
    conv_b = jax.random.normal(k2, (feat_channels,), jnp.float32) * 0.01
    embed_w = jax.random.normal(k3, (feat_channels, embed_size),
                                jnp.float32) * 0.1
    embed_b = jax.random.normal(k4, (embed_size,), jnp.float32) * 0.01
    return dict(conv_w=conv_w, conv_b=conv_b, embed_w=embed_w, embed_b=embed_b)


def reference_forward(images_nchw, params):
    """Pure-JAX reference (conv operands rounded to bf16 to match the kernel)."""
    x = jnp.transpose(images_nchw, (0, 2, 3, 1))
    xb = x.astype(jnp.bfloat16).astype(jnp.float32)
    wb = params["conv_w"].astype(jnp.bfloat16).astype(jnp.float32)
    feats = jax.lax.conv_general_dilated(
        xb, wb, window_strides=(1, 1), padding="SAME",
        dimension_numbers=("NHWC", "HWIO", "NHWC"),
        precision=jax.lax.Precision.HIGHEST)
    feats = jnp.maximum(feats + params["conv_b"][None, None, None, :], 0.0)
    pooled = jnp.mean(feats, axis=(1, 2))
    return pooled @ params["embed_w"] + params["embed_b"]


if __name__ == "__main__":
    # Small shapes consistent with the module's forward:
    #   images (batch=2, channels=3, 16, 16); 128 feature channels stand in
    #   for resnet.fc.in_features=2048 (lane-aligned); embed_size=16.
    key = jax.random.PRNGKey(0)
    k_img, k_par = jax.random.split(key)
    images = jax.random.normal(k_img, (2, 3, 16, 16), jnp.float32)
    params = init_params(k_par, in_channels=3, feat_channels=128, embed_size=16)

    out = jax.jit(encoder_cnn_forward)(images, params)
    jax.block_until_ready(out)
    assert out.shape == (2, 16), out.shape

    ref = reference_forward(images, params)
    max_err = float(jnp.max(jnp.abs(out - ref)))
    assert jnp.allclose(out, ref, rtol=2e-2, atol=2e-2), max_err
    print("KERNEL_OK")
</pallas_src>

<mosaic_0001>
module attributes {stable_mosaic.version = 11 : i64} {
  func.func @conv_pool_sum_kernel(%arg0: i32, %arg1: i32, %arg2: i32, %arg3: memref<1x18x18x3xbf16, #tpu.memory_space<vmem>>, %arg4: memref<3x3x3x128xbf16, #tpu.memory_space<vmem>>, %arg5: memref<1x128xf32, #tpu.memory_space<vmem>>, %arg6: memref<1x1x128xf32, #tpu.memory_space<vmem>>) attributes {dimension_semantics = [#tpu.dimension_semantics<parallel>, #tpu.dimension_semantics<parallel>, #tpu.dimension_semantics<arbitrary>], iteration_bounds = array<i64: 2, 1, 2>, scalar_prefetch = 0 : i64, scratch_operands = 0 : i64, tpu.core_type = #tpu.core_type<tc>, window_params = [{transform_indices = @transform_0, window_bounds = array<i64: 1, 18, 18, 3>}, {transform_indices = @transform_1, window_bounds = array<i64: 3, 3, 3, 128>}, {transform_indices = @transform_2, window_bounds = array<i64: 1, 128>}, {transform_indices = @transform_3, window_bounds = array<i64: 1, 1, 128>}]} {
    %c0_i32 = arith.constant 0 : i32
    %0 = arith.cmpi eq, %arg2, %c0_i32 : i32
    %1 = arith.extui %0 : i1 to i32
    %c0_i32_0 = arith.constant 0 : i32
    %2 = arith.cmpi ne, %1, %c0_i32_0 : i32
    scf.if %2 {
      %cst_87 = arith.constant 0.000000e+00 : f32
      %98 = vector.broadcast %cst_87 : f32 to vector<1x1x128xf32>
      %c0_88 = arith.constant 0 : index
      %c0_89 = arith.constant 0 : index
      %c0_90 = arith.constant 0 : index
      %99 = vector.load %arg6[%c0_88, %c0_89, %c0_90] : memref<1x1x128xf32, #tpu.memory_space<vmem>>, vector<1x1x128xf32>
      tpu.vector_store %arg6[%c0_88, %c0_89, %c0_90], %98 {strides = array<i32>} : memref<1x1x128xf32, #tpu.memory_space<vmem>>, vector<1x1x128xf32>,
    } else {
    }
    %c8_i32 = arith.constant 8 : i32
    %3 = arith.muli %arg2, %c8_i32 : i32
    %cst = arith.constant 0.000000e+00 : f32
    %4 = vector.broadcast %cst : f32 to vector<128x128xf32>
    %c0_i32_1 = arith.constant 0 : i32
    %5 = arith.addi %3, %c0_i32_1 : i32
    %c0 = arith.constant 0 : index
    %6 = arith.index_cast %5 : i32 to index
    %c0_2 = arith.constant 0 : index
    %c0_3 = arith.constant 0 : index
    %7 = vector.load %arg3[%c0, %6, %c0_2, %c0_3] : memref<1x18x18x3xbf16, #tpu.memory_space<vmem>>, vector<1x8x16x3xbf16>
    %8 = vector.shape_cast %7 : vector<1x8x16x3xbf16> to vector<8x16x3xbf16>
    %9 = vector.shape_cast %8 : vector<8x16x3xbf16> to vector<128x3xbf16>
    %c0_4 = arith.constant 0 : index
    %c0_5 = arith.constant 0 : index
    %c0_6 = arith.constant 0 : index
    %c0_7 = arith.constant 0 : index
    %10 = vector.load %arg4[%c0_4, %c0_5, %c0_6, %c0_7] : memref<3x3x3x128xbf16, #tpu.memory_space<vmem>>, vector<1x1x3x128xbf16>
    %11 = vector.shape_cast %10 : vector<1x1x3x128xbf16> to vector<3x128xbf16>
    %cst_8 = arith.constant dense<0.000000e+00> : vector<128x128xf32>
    %12 = tpu.matmul %9, %11, %cst_8 {dimension_numbers = #tpu.dot_dimension_numbers<[1], [0], [0], [1], [0, 0, 1, 1], [], []>} : vector<128x3xbf16>, vector<3x128xbf16>, vector<128x128xf32> -> vector<128x128xf32>
    %13 = arith.addf %4, %12 : vector<128x128xf32>
    %c0_i32_9 = arith.constant 0 : i32
    %14 = arith.addi %3, %c0_i32_9 : i32
    %c0_10 = arith.constant 0 : index
    %15 = arith.index_cast %14 : i32 to index
    %c1 = arith.constant 1 : index
    %c0_11 = arith.constant 0 : index
    %16 = vector.load %arg3[%c0_10, %15, %c1, %c0_11] : memref<1x18x18x3xbf16, #tpu.memory_space<vmem>>, vector<1x8x16x3xbf16>
    %17 = vector.shape_cast %16 : vector<1x8x16x3xbf16> to vector<8x16x3xbf16>
    %18 = vector.shape_cast %17 : vector<8x16x3xbf16> to vector<128x3xbf16>
    %c0_12 = arith.constant 0 : index
    %c1_13 = arith.constant 1 : index
    %c0_14 = arith.constant 0 : index
    %c0_15 = arith.constant 0 : index
    %19 = vector.load %arg4[%c0_12, %c1_13, %c0_14, %c0_15] : memref<3x3x3x128xbf16, #tpu.memory_space<vmem>>, vector<1x1x3x128xbf16>
    %20 = vector.shape_cast %19 : vector<1x1x3x128xbf16> to vector<3x128xbf16>
    %cst_16 = arith.constant dense<0.000000e+00> : vector<128x128xf32>
    %21 = tpu.matmul %18, %20, %cst_16 {dimension_numbers = #tpu.dot_dimension_numbers<[1], [0], [0], [1], [0, 0, 1, 1], [], []>} : vector<128x3xbf16>, vector<3x128xbf16>, vector<128x128xf32> -> vector<128x128xf32>
    %22 = arith.addf %13, %21 : vector<128x128xf32>
    %c0_i32_17 = arith.constant 0 : i32
    %23 = arith.addi %3, %c0_i32_17 : i32
    %c0_18 = arith.constant 0 : index
    %24 = arith.index_cast %23 : i32 to index
    %c2 = arith.constant 2 : index
    %c0_19 = arith.constant 0 : index
    %25 = vector.load %arg3[%c0_18, %24, %c2, %c0_19] : memref<1x18x18x3xbf16, #tpu.memory_space<vmem>>, vector<1x8x16x3xbf16>
    %26 = vector.shape_cast %25 : vector<1x8x16x3xbf16> to vector<8x16x3xbf16>
    %27 = vector.shape_cast %26 : vector<8x16x3xbf16> to vector<128x3xbf16>
    %c0_20 = arith.constant 0 : index
    %c2_21 = arith.constant 2 : index
    %c0_22 = arith.constant 0 : index
    %c0_23 = arith.constant 0 : index
    %28 = vector.load %arg4[%c0_20, %c2_21, %c0_22, %c0_23] : memref<3x3x3x128xbf16, #tpu.memory_space<vmem>>, vector<1x1x3x128xbf16>
    %29 = vector.shape_cast %28 : vector<1x1x3x128xbf16> to vector<3x128xbf16>
    %cst_24 = arith.constant dense<0.000000e+00> : vector<128x128xf32>
    %30 = tpu.matmul %27, %29, %cst_24 {dimension_numbers = #tpu.dot_dimension_numbers<[1], [0], [0], [1], [0, 0, 1, 1], [], []>} : vector<128x3xbf16>, vector<3x128xbf16>, vector<128x128xf32> -> vector<128x128xf32>
    %31 = arith.addf %22, %30 : vector<128x128xf32>
    %c1_i32 = arith.constant 1 : i32
    %32 = arith.addi %3, %c1_i32 : i32
    %c0_25 = arith.constant 0 : index
    %33 = arith.index_cast %32 : i32 to index
    %c0_26 = arith.constant 0 : index
    %c0_27 = arith.constant 0 : index
    %34 = vector.load %arg3[%c0_25, %33, %c0_26, %c0_27] : memref<1x18x18x3xbf16, #tpu.memory_space<vmem>>, vector<1x8x16x3xbf16>
    %35 = vector.shape_cast %34 : vector<1x8x16x3xbf16> to vector<8x16x3xbf16>
    %36 = vector.shape_cast %35 : vector<8x16x3xbf16> to vector<128x3xbf16>
    %c1_28 = arith.constant 1 : index
    %c0_29 = arith.constant 0 : index
    %c0_30 = arith.constant 0 : index
    %c0_31 = arith.constant 0 : index
    %37 = vector.load %arg4[%c1_28, %c0_29, %c0_30, %c0_31] : memref<3x3x3x128xbf16, #tpu.memory_space<vmem>>, vector<1x1x3x128xbf16>
    %38 = vector.shape_cast %37 : vector<1x1x3x128xbf16> to vector<3x128xbf16>
    %cst_32 = arith.constant dense<0.000000e+00> : vector<128x128xf32>
    %39 = tpu.matmul %36, %38, %cst_32 {dimension_numbers = #tpu.dot_dimension_numbers<[1], [0], [0], [1], [0, 0, 1, 1], [], []>} : vector<128x3xbf16>, vector<3x128xbf16>, vector<128x128xf32> -> vector<128x128xf32>
    %40 = arith.addf %31, %39 : vector<128x128xf32>
    %c1_i32_33 = arith.constant 1 : i32
    %41 = arith.addi %3, %c1_i32_33 : i32
    %c0_34 = arith.constant 0 : index
    %42 = arith.index_cast %41 : i32 to index
    %c1_35 = arith.constant 1 : index
    %c0_36 = arith.constant 0 : index
    %43 = vector.load %arg3[%c0_34, %42, %c1_35, %c0_36] : memref<1x18x18x3xbf16, #tpu.memory_space<vmem>>, vector<1x8x16x3xbf16>
    %44 = vector.shape_cast %43 : vector<1x8x16x3xbf16> to vector<8x16x3xbf16>
    %45 = vector.shape_cast %44 : vector<8x16x3xbf16> to vector<128x3xbf16>
    %c1_37 = arith.constant 1 : index
    %c1_38 = arith.constant 1 : index
    %c0_39 = arith.constant 0 : index
    %c0_40 = arith.constant 0 : index
    %46 = vector.load %arg4[%c1_37, %c1_38, %c0_39, %c0_40] : memref<3x3x3x128xbf16, #tpu.memory_space<vmem>>, vector<1x1x3x128xbf16>
    %47 = vector.shape_cast %46 : vector<1x1x3x128xbf16> to vector<3x128xbf16>
    %cst_41 = arith.constant dense<0.000000e+00> : vector<128x128xf32>
    %48 = tpu.matmul %45, %47, %cst_41 {dimension_numbers = #tpu.dot_dimension_numbers<[1], [0], [0], [1], [0, 0, 1, 1], [], []>} : vector<128x3xbf16>, vector<3x128xbf16>, vector<128x128xf32> -> vector<128x128xf32>
    %49 = arith.addf %40, %48 : vector<128x128xf32>
    %c1_i32_42 = arith.constant 1 : i32
    %50 = arith.addi %3, %c1_i32_42 : i32
    %c0_43 = arith.constant 0 : index
    %51 = arith.index_cast %50 : i32 to index
    %c2_44 = arith.constant 2 : index
    %c0_45 = arith.constant 0 : index
    %52 = vector.load %arg3[%c0_43, %51, %c2_44, %c0_45] : memref<1x18x18x3xbf16, #tpu.memory_space<vmem>>, vector<1x8x16x3xbf16>
    %53 = vector.shape_cast %52 : vector<1x8x16x3xbf16> to vector<8x16x3xbf16>
    %54 = vector.shape_cast %53 : vector<8x16x3xbf16> to vector<128x3xbf16>
    %c1_46 = arith.constant 1 : index
    %c2_47 = arith.constant 2 : index
    %c0_48 = arith.constant 0 : index
    %c0_49 = arith.constant 0 : index
    %55 = vector.load %arg4[%c1_46, %c2_47, %c0_48, %c0_49] : memref<3x3x3x128xbf16, #tpu.memory_space<vmem>>, vector<1x1x3x128xbf16>
    %56 = vector.shape_cast %55 : vector<1x1x3x128xbf16> to vector<3x128xbf16>
    %cst_50 = arith.constant dense<0.000000e+00> : vector<128x128xf32>
    %57 = tpu.matmul %54, %56, %cst_50 {dimension_numbers = #tpu.dot_dimension_numbers<[1], [0], [0], [1], [0, 0, 1, 1], [], []>} : vector<128x3xbf16>, vector<3x128xbf16>, vector<128x128xf32> -> vector<128x128xf32>
    %58 = arith.addf %49, %57 : vector<128x128xf32>
    %c2_i32 = arith.constant 2 : i32
    %59 = arith.addi %3, %c2_i32 : i32
    %c0_51 = arith.constant 0 : index
    %60 = arith.index_cast %59 : i32 to index
    %c0_52 = arith.constant 0 : index
    %c0_53 = arith.constant 0 : index
    %61 = vector.load %arg3[%c0_51, %60, %c0_52, %c0_53] : memref<1x18x18x3xbf16, #tpu.memory_space<vmem>>, vector<1x8x16x3xbf16>
    %62 = vector.shape_cast %61 : vector<1x8x16x3xbf16> to vector<8x16x3xbf16>
    %63 = vector.shape_cast %62 : vector<8x16x3xbf16> to vector<128x3xbf16>
    %c2_54 = arith.constant 2 : index
    %c0_55 = arith.constant 0 : index
    %c0_56 = arith.constant 0 : index
    %c0_57 = arith.constant 0 : index
    %64 = vector.load %arg4[%c2_54, %c0_55, %c0_56, %c0_57] : memref<3x3x3x128xbf16, #tpu.memory_space<vmem>>, vector<1x1x3x128xbf16>
    %65 = vector.shape_cast %64 : vector<1x1x3x128xbf16> to vector<3x128xbf16>
    %cst_58 = arith.constant dense<0.000000e+00> : vector<128x128xf32>
    %66 = tpu.matmul %63, %65, %cst_58 {dimension_numbers = #tpu.dot_dimension_numbers<[1], [0], [0], [1], [0, 0, 1, 1], [], []>} : vector<128x3xbf16>, vector<3x128xbf16>, vector<128x128xf32> -> vector<128x128xf32>
    %67 = arith.addf %58, %66 : vector<128x128xf32>
    %c2_i32_59 = arith.constant 2 : i32
    %68 = arith.addi %3, %c2_i32_59 : i32
    %c0_60 = arith.constant 0 : index
    %69 = arith.index_cast %68 : i32 to index
    %c1_61 = arith.constant 1 : index
    %c0_62 = arith.constant 0 : index
    %70 = vector.load %arg3[%c0_60, %69, %c1_61, %c0_62] : memref<1x18x18x3xbf16, #tpu.memory_space<vmem>>, vector<1x8x16x3xbf16>
    %71 = vector.shape_cast %70 : vector<1x8x16x3xbf16> to vector<8x16x3xbf16>
    %72 = vector.shape_cast %71 : vector<8x16x3xbf16> to vector<128x3xbf16>
    %c2_63 = arith.constant 2 : index
    %c1_64 = arith.constant 1 : index
    %c0_65 = arith.constant 0 : index
    %c0_66 = arith.constant 0 : index
    %73 = vector.load %arg4[%c2_63, %c1_64, %c0_65, %c0_66] : memref<3x3x3x128xbf16, #tpu.memory_space<vmem>>, vector<1x1x3x128xbf16>
    %74 = vector.shape_cast %73 : vector<1x1x3x128xbf16> to vector<3x128xbf16>
    %cst_67 = arith.constant dense<0.000000e+00> : vector<128x128xf32>
    %75 = tpu.matmul %72, %74, %cst_67 {dimension_numbers = #tpu.dot_dimension_numbers<[1], [0], [0], [1], [0, 0, 1, 1], [], []>} : vector<128x3xbf16>, vector<3x128xbf16>, vector<128x128xf32> -> vector<128x128xf32>
    %76 = arith.addf %67, %75 : vector<128x128xf32>
    %c2_i32_68 = arith.constant 2 : i32
    %77 = arith.addi %3, %c2_i32_68 : i32
    %c0_69 = arith.constant 0 : index
    %78 = arith.index_cast %77 : i32 to index
    %c2_70 = arith.constant 2 : index
    %c0_71 = arith.constant 0 : index
    %79 = vector.load %arg3[%c0_69, %78, %c2_70, %c0_71] : memref<1x18x18x3xbf16, #tpu.memory_space<vmem>>, vector<1x8x16x3xbf16>
    %80 = vector.shape_cast %79 : vector<1x8x16x3xbf16> to vector<8x16x3xbf16>
    %81 = vector.shape_cast %80 : vector<8x16x3xbf16> to vector<128x3xbf16>
    %c2_72 = arith.constant 2 : index
    %c2_73 = arith.constant 2 : index
    %c0_74 = arith.constant 0 : index
    %c0_75 = arith.constant 0 : index
    %82 = vector.load %arg4[%c2_72, %c2_73, %c0_74, %c0_75] : memref<3x3x3x128xbf16, #tpu.memory_space<vmem>>, vector<1x1x3x128xbf16>
    %83 = vector.shape_cast %82 : vector<1x1x3x128xbf16> to vector<3x128xbf16>
    %cst_76 = arith.constant dense<0.000000e+00> : vector<128x128xf32>
    %84 = tpu.matmul %81, %83, %cst_76 {dimension_numbers = #tpu.dot_dimension_numbers<[1], [0], [0], [1], [0, 0, 1, 1], [], []>} : vector<128x3xbf16>, vector<3x128xbf16>, vector<128x128xf32> -> vector<128x128xf32>
    %85 = arith.addf %76, %84 : vector<128x128xf32>
    %c0_77 = arith.constant 0 : index
    %c0_78 = arith.constant 0 : index
    %86 = vector.load %arg5[%c0_77, %c0_78] : memref<1x128xf32, #tpu.memory_space<vmem>>, vector<1x128xf32>
    %87 = vector.shape_cast %86 : vector<1x128xf32> to vector<128xf32>
    %88 = vector.shape_cast %87 : vector<128xf32> to vector<1x128xf32>
    %89 = vector.broadcast %88 : vector<1x128xf32> to vector<128x128xf32>
    %90 = arith.addf %85, %89 : vector<128x128xf32>
    %cst_79 = arith.constant 0.000000e+00 : f32
    %91 = vector.broadcast %cst_79 : f32 to vector<128x128xf32>
    %92 = arith.maximumf %90, %91 : vector<128x128xf32>
    %c0_80 = arith.constant 0 : index
    %c0_81 = arith.constant 0 : index
    %c0_82 = arith.constant 0 : index
    %93 = vector.load %arg6[%c0_80, %c0_81, %c0_82] : memref<1x1x128xf32, #tpu.memory_space<vmem>>, vector<1x1x128xf32>
    %cst_83 = arith.constant dense<0.000000e+00> : vector<128xf32>
    %94 = vector.multi_reduction <add>, %92, %cst_83 [0] : vector<128x128xf32> to vector<128xf32>
    %95 = vector.shape_cast %94 : vector<128xf32> to vector<1x1x128xf32>
    %96 = arith.addf %93, %95 : vector<1x1x128xf32>
    %c0_84 = arith.constant 0 : index
    %c0_85 = arith.constant 0 : index
    %c0_86 = arith.constant 0 : index
    %97 = vector.load %arg6[%c0_84, %c0_85, %c0_86] : memref<1x1x128xf32, #tpu.memory_space<vmem>>, vector<1x1x128xf32>
    tpu.vector_store %arg6[%c0_84, %c0_85, %c0_86], %96 {strides = array<i32>} : memref<1x1x128xf32, #tpu.memory_space<vmem>>, vector<1x1x128xf32>,
    return
  }
  func.func @transform_0(%arg0: i32, %arg1: i32, %arg2: i32) -> (i32, i32, i32, i32) {
    %c0_i32 = arith.constant 0 : i32
    %c0_i32_0 = arith.constant 0 : i32
    %c0_i32_1 = arith.constant 0 : i32
    %c0_i32_2 = arith.constant 0 : i32
    return %arg0, %c0_i32, %c0_i32_0, %c0_i32_1 : i32, i32, i32, i32
  }
  func.func @transform_1(%arg0: i32, %arg1: i32, %arg2: i32) -> (i32, i32, i32, i32) {
    %c0_i32 = arith.constant 0 : i32
    %c0_i32_0 = arith.constant 0 : i32
    %c0_i32_1 = arith.constant 0 : i32
    %c0_i32_2 = arith.constant 0 : i32
    return %c0_i32, %c0_i32_0, %c0_i32_1, %arg1 : i32, i32, i32, i32
  }
  func.func @transform_2(%arg0: i32, %arg1: i32, %arg2: i32) -> (i32, i32) {
    %c0_i32 = arith.constant 0 : i32
    %c0_i32_0 = arith.constant 0 : i32
    return %c0_i32, %arg1 : i32, i32
  }
  func.func @transform_3(%arg0: i32, %arg1: i32, %arg2: i32) -> (i32, i32, i32) {
    %c0_i32 = arith.constant 0 : i32
    %c0_i32_0 = arith.constant 0 : i32
    return %arg0, %c0_i32, %arg1 : i32, i32, i32
  }
}

module attributes {stable_mosaic.version = 11 : i64} {
  func.func @pool_embed_kernel(%arg0: i32, %arg1: memref<2x128xf32, #tpu.memory_space<vmem>>, %arg2: memref<128x128xf32, #tpu.memory_space<vmem>>, %arg3: memref<1x128xf32, #tpu.memory_space<vmem>>, %arg4: memref<2x128xf32, #tpu.memory_space<vmem>>) attributes {dimension_semantics = [#tpu.dimension_semantics<parallel>], iteration_bounds = array<i64: 1>, scalar_prefetch = 0 : i64, scratch_operands = 0 : i64, tpu.core_type = #tpu.core_type<tc>, window_params = [{pipeline_mode = #tpu.pipeline_mode<synchronous>, transform_indices = @transform_0, window_bounds = array<i64: 2, 128>}, {transform_indices = @transform_1, window_bounds = array<i64: 128, 128>}, {transform_indices = @transform_2, window_bounds = array<i64: 1, 128>}, {transform_indices = @transform_3, window_bounds = array<i64: 2, 128>}]} {
    %c0 = arith.constant 0 : index
    %c0_0 = arith.constant 0 : index
    %0 = vector.load %arg1[%c0, %c0_0] : memref<2x128xf32, #tpu.memory_space<vmem>>, vector<2x128xf32>
    %cst = arith.constant 3.906250e-03 : f32
    %1 = vector.broadcast %cst : f32 to vector<2x128xf32>
    %2 = arith.mulf %0, %1 : vector<2x128xf32>
    %c0_1 = arith.constant 0 : index
    %c0_2 = arith.constant 0 : index
    %3 = vector.load %arg2[%c0_1, %c0_2] : memref<128x128xf32, #tpu.memory_space<vmem>>, vector<128x128xf32>
    %cst_3 = arith.constant dense<0.000000e+00> : vector<2x128xf32>
    %4 = tpu.matmul %2, %3, %cst_3 {dimension_numbers = #tpu.dot_dimension_numbers<[1], [0], [0], [1], [0, 0, 1, 1], [], []>} : vector<2x128xf32>, vector<128x128xf32>, vector<2x128xf32> -> vector<2x128xf32>
    %c0_4 = arith.constant 0 : index
    %c0_5 = arith.constant 0 : index
    %5 = vector.load %arg3[%c0_4, %c0_5] : memref<1x128xf32, #tpu.memory_space<vmem>>, vector<1x128xf32>
    %6 = vector.broadcast %5 : vector<1x128xf32> to vector<2x128xf32>
    %7 = arith.addf %4, %6 : vector<2x128xf32>
    %c0_6 = arith.constant 0 : index
    %c0_7 = arith.constant 0 : index
    %8 = vector.load %arg4[%c0_6, %c0_7] : memref<2x128xf32, #tpu.memory_space<vmem>>, vector<2x128xf32>
    tpu.vector_store %arg4[%c0_6, %c0_7], %7 {strides = array<i32>} : memref<2x128xf32, #tpu.memory_space<vmem>>, vector<2x128xf32>,
    return
  }
  func.func @transform_0(%arg0: i32) -> (i32, i32) {
    %c0_i32 = arith.constant 0 : i32
    %c0_i32_0 = arith.constant 0 : i32
    %c0_i32_1 = arith.constant 0 : i32
    return %c0_i32, %c0_i32_0 : i32, i32
  }
  func.func @transform_1(%arg0: i32) -> (i32, i32) {
    %c0_i32 = arith.constant 0 : i32
    %c0_i32_0 = arith.constant 0 : i32
    return %c0_i32, %arg0 : i32, i32
  }
  func.func @transform_2(%arg0: i32) -> (i32, i32) {
    %c0_i32 = arith.constant 0 : i32
    %c0_i32_0 = arith.constant 0 : i32
    return %c0_i32, %arg0 : i32, i32
  }
  func.func @transform_3(%arg0: i32) -> (i32, i32) {
    %c0_i32 = arith.constant 0 : i32
    %c0_i32_0 = arith.constant 0 : i32
    return %c0_i32, %arg0 : i32, i32
  }
}

</mosaic_0001>

<bundles_post_ra>
// kernel: encoder_cnn_forward.3
= control target key start
LH: loop header
LB: loop body
LE: loop exit
PB: predicated region body
PF: predicated region fallthrough
CT: control target
= control target key end

     0   :  { %s180_s0 = inlined_call_operand.vmem [shape: f32[2,128], index: 0, kind: input, shape index: {}]   ;;  %s181_s1 = inlined_call_operand.vmem [shape: f32[128,128], index: 1, kind: input, shape index: {}]   ;;  %s182_s2 = inlined_call_operand.vmem [shape: f32[1,128], index: 2, kind: input, shape index: {}]   ;;  %s183_s3 = inlined_call_operand.hbm [shape: f32[2,128], index: 3, kind: output, shape index: {}]  }
   0x1   :  { %v32_v0 = vld [vmem:[%s181_s1 + $0x78] sm:$0xff]  ;;  %v31_v1 = vld [vmem:[%s181_s1 + $0x70] sm:$0xff]  ;;  %v30_v2 = vld [vmem:[%s181_s1 + $0x68] sm:$0xff] }
   0x2   :  { %37 = vmatpush.msra.mxu0 %v32_v0  ;;  %v29_v3 = vld [vmem:[%s181_s1 + $0x60] sm:$0xff]  ;;  %v28_v4 = vld [vmem:[%s181_s1 + $0x58] sm:$0xff] }
   0x4   :  { %38 = vmatpush.msra.mxu0 %v31_v1 }
   0x6   :  { %39 = vmatpush.msra.mxu0 %v30_v2 }
   0x7   :  { %8 = vsyncpa [#allocation3], 0  ;;  %v27_v5 = vld [vmem:[%s181_s1 + $0x50] sm:$0xff]  ;;  %v26_v6 = vld [vmem:[%s181_s1 + $0x48] sm:$0xff]  ;;  %s102_s21 = smov [#allocation2]   ;;  %s65_s24 = sshll.u32 %s183_s3, 4  ;;  %s66_s24 = int_to_ptr.hbm [resolvable:$true] %s65_s24 }
   0x8   :  { %40 = vmatpush.msra.mxu0 %v29_v3  ;;  %v25_v7 = vld [vmem:[%s181_s1 + $0x40] sm:$0xff]  ;;  %v24_v8 = vld [vmem:[%s181_s1 + $0x38] sm:$0xff]  ;;  %v23_v9 = vld [vmem:[%s181_s1 + $0x30] sm:$0xff]  ;;  %s63_s22 = sshll.u32 %s102_s21, 4  ;;  %s64_s22 = int_to_ptr.vmem [resolvable:$true] %s63_s22 }
   0x9   :  { %v22_v10 = vld [vmem:[%s181_s1 + $0x28] sm:$0xff]  ;;  %v21_v11 = vld [vmem:[%s181_s1 + $0x20] sm:$0xff]  ;;  %v20_v12 = vld [vmem:[%s181_s1 + $0x18] sm:$0xff] }
   0xa   :  { %41 = vmatpush.msra.mxu0 %v28_v4  ;;  %v19_v13 = vld [vmem:[%s181_s1 + $0x10] sm:$0xff]  ;;  %v15_v14 = vld [vmem:[%s180_s0] sm:$0x3]  ;;  %v18_v15 = vld [vmem:[%s181_s1 + $0x8] sm:$0xff] }
   0xb   :  { %v17_v16 = vld [vmem:[%s181_s1] sm:$0xff]  ;;  %v16_v17 = vmul.f32 0.00390625, %v15_v14 }
   0xc   :  { %42 = vmatpush.msra.mxu0 %v27_v5  ;;  %v75_v18 = vld [vmem:[%s182_s2] ss:$0 sm:$0xff] }
   0xe   :  { %43 = vmatpush.msra.mxu0 %v26_v6 }
  0x10   :  { %44 = vmatpush.msra.mxu0 %v25_v7 }
  0x12   :  { %45 = vmatpush.msra.mxu0 %v24_v8 }
  0x14   :  { %46 = vmatpush.msra.mxu0 %v23_v9 }
  0x16   :  { %47 = vmatpush.msra.mxu0 %v22_v10 }
  0x18   :  { %48 = vmatpush.msra.mxu0 %v21_v11 }
  0x1a   :  { %49 = vmatpush.msra.mxu0 %v20_v12 }
  0x1c   :  { %50 = vmatpush.msra.mxu0 %v19_v13 }
  0x1e   :  { %51 = vmatpush.msra.mxu0 %v18_v15 }
  0x20   :  { %52 = vmatpush.msra.mxu0 %v17_v16 }
  0x21   :  { %53 = vmatmul.f32.vlgmr.msra.gmra.mxu0 %v16_v17 }
  0x9e   :  { %v54_v19 = vpop.f32.mrf.mxu0 }
  0x9f   :  { %v55_v20 = vadd.f32 %v75_v18, %v54_v19 }
  0xa1   :  { %57 = vst [vmem:[#allocation2] sm:$0x3] %v55_v20 }
  0xa2   :  { %68 = dma.vmem_to_hbm [thread:$0]  %s64_s22, 32, %s66_s24, [#allocation3]  }
  0xa3   :  { %100 = dma.done.wait [#allocation3], 32  }
  0xa4   :  { %101 = vsyncadd [#allocation3], 4294967264 }
  0xa5   :  { %73 = vsyncpa [#allocation3], 1 }

// kernel: encoder_cnn_forward.2
= control target key start
LH: loop header
LB: loop body
LE: loop exit
PB: predicated region body
PF: predicated region fallthrough
CT: control target
= control target key end

     0   :  { %s2884_s12 = smov 0   ;;  %s2886_s13 = smov 0   ;;  %s3706_s0 = inlined_call_operand.vmem [shape: bf16[2,18,18,3], index: 0, kind: input, shape index: {}]   ;;  %s3707_s1 = inlined_call_operand.vmem [shape: bf16[3,3,3,128], index: 1, kind: input, shape index: {}]   ;;  %s3708_s2 = inlined_call_operand.vmem [shape: f32[1,128], index: 2, kind: input, shape index: {}]   ;;  %s3709_s3 = inlined_call_operand.vmem [shape: f32[2,1,128], index: 3, kind: output, shape index: {}]  }
   0x1   :  { %s2888_s14 = smov 0   ;;  %s2890_s15 = smov 0  }
   0x2   :  { %s2892_s16 = smov 0  }
   0x3 LB: > { %s25_s17 = sadd.s32 1, %s2852_s14  ;;  %s32_s18 = sadd.s32 1, %s2856_s15  ;;  %s2860_s16 = sphi %s2892_s16, %s13_s16   ;;  %s2856_s15 = sphi %s2890_s15, %s3717_s15   ;;  %s2852_s14 = sphi %s2888_s14, %s3716_s14   ;;  %s2848_s13 = sphi %s2886_s13, %s3715_s13   ;;  %s2844_s12 = sphi %s2884_s12, %s3714_s12  }
   0x4   : > { %p26_p0 = scmp.ge.s32.totalorder %s25_s17, 2  ;;  %p2442_p1 = scmp.ge.s32.totalorder %s2860_s16, 1 }
   0x5   : > { %p175_p2 = scmp.lt.s32.totalorder %s2860_s16, 5 }
   0x6   : > { %s3719_s17 = smov (%p26_p0, %s25_s17), 0  ;;  %s3721_s18 = smov (!%p26_p0, %s32_s18), %s2856_s15 }
   0x7   : > { %p176_p3 = pnand %p2442_p1, %p175_p2  ;;  %p34_p4 = scmp.ge.s32.totalorder %s3721_s18, 2 }
   0x8   : > { %p207_p5 = scmp.lt.s32.totalorder (!%p176_p3), %s2848_s13, 1  ;;  %p2444_p6 = scmp.ne.s32.totalorder (!%p176_p3), %s2844_s12, 0 }
   0x9   : > { %s3723_s18 = smov (%p34_p4, %s3721_s18), 0  ;;  %179 = sbr.rel (%p176_p3) target bundleno = 488 (0x1e8), region = 32 }
   0xe   : > { %s3725_s13 = smov (!%p207_p5, %s2848_s13), 1  ;;  %229 = sbr.rel (%p2444_p6) target bundleno = 21 (0x15), region = 36 }
   0xf   : > { %s2778_s19 = smul.u32 216, %s3725_s13  ;;  %s2919_s22 = scalar_lea.vmem %s3709_s3, %s3725_s13 }
  0x11   : > { %s211_s25 = scalar_lea.vmem %s3706_s0, %s2778_s19 }
  0x13   : > { %v2862_v0 = vmov 0.0  }
  0x14   : > { %230 = vst [vmem:[%s2919_s22] sm:$0x1] %v2862_v0 }
  0x15 PF: > { %v2448_v1 = vld [vmem:[%s3707_s1 + $0x2] sm:$0x3]  ;;  %vm506_vm0 = vcmask 1040384   ;;  %vm507_vm1 = vcmask 1041408   ;;  %s2750_s28 = smul.u32 96, %s2844_s12  ;;  %v2863_v2 = vmov 65535  }
  0x16   : > { %v508_v3 = vsel %vm506_vm0, 4294967295, %v2863_v2  ;;  %vm260_vm2 = vsmask.f32 3328  ;;  %vm261_vm3 = vsmask.f32 7440  ;;  %vm481_vm4 = vcmask 23552  }
  0x17   : > { %v2930_v4 = vsel %vm507_vm1, %v508_v3, 0  ;;  %s2932_s29 = scalar_lea.vmem %s211_s25, %s2750_s28  ;;  %v2505_v5 = vld [vmem:[%s3707_s1 + $0x4] sm:$0x3]  ;;  %v2532_v6 = vld [vmem:[%s3707_s1 + $0x6] sm:$0x3]  ;;  %vm2969_vm5 = vmor %vm260_vm2, %vm261_vm3  ;;  %vm702_vm6 = vcmask 1042432  }
  0x18   : > { %v511_v7 = vand.u32 %v2448_v1, %v2930_v4  ;;  %v239_v8 = vld [vmem:[%s2932_s29 + $0x18] sm:$0xf]  ;;  %v2943_v9 = vld [vmem:[%s2932_s29 + $0x1c] sm:$0xf]  ;;  %v2946_v10 = vld [vmem:[%s2932_s29 + $0x20] sm:$0x1]  ;;  %v812_v11 = vand.u32 %v2505_v5, %v2930_v4  ;;  %v966_v12 = vand.u32 %v2532_v6, %v2930_v4 }
  0x19   : > { %v312_v13 = vshrl.u32 %v239_v8, 16  ;;  %v315_v14 = vshll.u32 %v239_v8, 16  ;;  %v321_v15 = vshll.u32 %v2943_v9, 16  ;;  %v325_v16 = vshrl.u32 %v2943_v9, 16  ;;  %v243_v17 = vld [vmem:[%s2932_s29 + $0x30] sm:$0xf] }
  0x1a   : > { %2775 = vmatpush.bf16.msra.mxu1 %v511_v7  ;;  %2776 = vmatpush.bf16.msra.mxu2 %v511_v7  ;;  %v331_v18 = vshll.u32 %v2946_v10, 16  ;;  %v2955_v19 = vld [vmem:[%s2932_s29 + $0x34] sm:$0xf]  ;;  %v2958_v20 = vld [vmem:[%s2932_s29 + $0x38] sm:$0x1]  ;;  %v360_v21 = vshrl.u32 %v243_v17, 16 }
  0x1b   : > { %2777 = vmatpush.bf16.msra.mxu3 %v511_v7  ;;  %520 = vmatpush.bf16.msra.mxu0 %v511_v7  ;;  %v314_v22 = vrot.slane %v312_v13, 4  ;;  %v317_v23 = vrot.slane %v315_v14, 5  ;;  %v323_v24 = vrot.slane %v321_v15, 5  ;;  %v327_v25 = vrot.slane %v325_v16, 4  ;;  %v247_v26 = vld [vmem:[%s2932_s29 + $0x48] sm:$0xf] }
  0x1c   : > { %v333_v27 = vrot.slane %v331_v18, 5  ;;  %v362_v28 = vrot.slane %v360_v21, 4  ;;  %v363_v29 = vshll.u32 %v243_v17, 16  ;;  %v369_v30 = vshll.u32 %v2955_v19, 16  ;;  %v2965_v35 = vld [vmem:[%s2932_s29 + $0x4c] sm:$0xf] }
  0x1d   : > { %v318_v31 = vor.u32 %v317_v23, %v314_v22  ;;  %v328_v32 = vor.u32 %v327_v25, %v323_v24  ;;  %v373_v33 = vshrl.u32 %v2955_v19, 16  ;;  %v379_v34 = vshll.u32 %v2958_v20, 16  ;;  %v2974_v46 = vld [vmem:[%s2932_s29 + $0x50] sm:$0x1]  ;;  %v235_v54 = vld [vmem:[%s2932_s29] sm:$0xf] }
  0x1e   : > { %821 = vmatpush.bf16.msrb.mxu2 %v812_v11  ;;  %v365_v37 = vrot.slane %v363_v29, 5  ;;  %v371_v38 = vrot.slane %v369_v30, 5  ;;  %v408_v39 = vshrl.u32 %v247_v26, 16  ;;  %v411_v40 = vshll.u32 %v247_v26, 16  ;;  %v2987_v2 = vld [vmem:[%s2932_s29 + $0x4] sm:$0xf] }
  0x1f   : > { %975 = vmatpush.bf16.msrb.mxu3 %v966_v12  ;;  %v319_v41 = vrot.slane %v318_v31, 4  ;;  %v329_v42 = vrot.slane %v328_v32, 4  ;;  %v375_v43 = vrot.slane %v373_v33, 4  ;;  %v381_v44 = vrot.slane %v379_v34, 5  ;;  %v2992_v11 = vld [vmem:[%s2932_s29 + $0x8] sm:$0x1] }
  0x20   : > { %v366_v45 = vor.u32 %v365_v37, %v362_v28  ;;  %v410_v47 = vrot.slane %v408_v39, 4  ;;  %v413_v48 = vrot.slane %v411_v40, 5  ;;  %v417_v49 = vshll.u32 %v2965_v35, 16  ;;  %v251_v16 = vld [vmem:[%s3707_s1] sm:$0x3] }
  0x21   : > { %v324_v50 = vsel %vm2969_vm5, %v319_v41, %v323_v24  ;;  %v334_v51 = vsel %vm2969_vm5, %v329_v42, %v333_v27  ;;  %v376_v52 = vor.u32 %v375_v43, %v371_v38  ;;  %v421_v53 = vshrl.u32 %v2965_v35, 16  ;;  %v2597_v17 = vld [vmem:[%s3707_s1 + $0x8] sm:$0x3]  ;;  %v241_v24 = vld [vmem:[%s2932_s29 + $0x24] sm:$0xf] }
  0x22   : > { %v461_v55 = vunpack.c.l.b16 %v324_v50  ;;  %v462_v56 = vunpack.c.l.b16 %v334_v51  ;;  %v367_v57 = vrot.slane %v366_v45, 4  ;;  %v414_v58 = vor.u32 %v413_v48, %v410_v47  ;;  %v3009_v29 = vld [vmem:[%s2932_s29 + $0x28] sm:$0xf]  ;;  %v3015_v34 = vld [vmem:[%s2932_s29 + $0x2c] sm:$0x1] }
  0x23   : > { %v377_v59 = vrot.slane %v376_v52, 4  ;;  %v419_v60 = vrot.slane %v417_v49, 5  ;;  %v423_v61 = vrot.slane %v421_v53, 4  ;;  %v427_v62 = vshll.u32 %v2974_v46, 16  ;;  %v245_v45 = vld [vmem:[%s2932_s29 + $0x3c] sm:$0xf] }
  0x24   : > { %v475_v63 = vpack.c.b16 %v462_v56, %v461_v55  ;;  %v372_v0 = vsel %vm2969_vm5, %v367_v57, %v371_v38  ;;  %v415_v1 = vrot.slane %v414_v58, 4  ;;  %v264_v3 = vshrl.u32 %v235_v54, 16  ;;  %v3024_v55 = vld [vmem:[%s2932_s29 + $0x40] sm:$0xf] }
  0x25   : > { %v382_v5 = vsel %vm2969_vm5, %v377_v59, %v381_v44  ;;  %v465_v6 = vunpack.c.l.b16 %v372_v0  ;;  %v424_v7 = vor.u32 %v423_v61, %v419_v60  ;;  %v429_v8 = vrot.slane %v427_v62, 5  ;;  %v3030_v59 = vld [vmem:[%s2932_s29 + $0x44] sm:$0x1] }
  0x26   : > { %2451 = vmatmul.msk.bf16.vlgmr.msra.gmra.mxu1 %vm481_vm4, %v475_v63  ;;  %v466_v12 = vunpack.c.l.b16 %v382_v5  ;;  %v420_v13 = vsel %vm2969_vm5, %v415_v1, %v419_v60  ;;  %v266_v14 = vrot.slane %v264_v3, 4  ;;  %v267_v15 = vshll.u32 %v235_v54, 16  ;;  %v249_v1 = vld [vmem:[%s2932_s29 + $0x54] sm:$0xf] }
  0x27   : > { %v425_v18 = vrot.slane %v424_v7, 4  ;;  %v469_v21 = vunpack.c.l.b16 %v420_v13  ;;  %v273_v22 = vshll.u32 %v2987_v2, 16  ;;  %v277_v23 = vshrl.u32 %v2987_v2, 16 }
  0x28   : > { %v477_v25 = vpack.c.b16 %v466_v12, %v465_v6  ;;  %v269_v26 = vrot.slane %v267_v15, 5  ;;  %v283_v27 = vshll.u32 %v2992_v11, 16  ;;  %v710_v28 = vrot.slane %v2992_v11, 5 }
  0x29   : > { %v430_v30 = vsel %vm2969_vm5, %v425_v18, %v429_v8  ;;  %v275_v31 = vrot.slane %v273_v22, 5  ;;  %v279_v32 = vrot.slane %v277_v23, 4  ;;  %v627_v33 = vand.u32 %v2930_v4, %v251_v16  ;;  %v3039_v18 = vld [vmem:[%s2932_s29 + $0x58] sm:$0xf] }
  0x2a   : > { %2453 = vmatmul.msk.bf16.vlgmr.msra.gmra.mxu2 %vm481_vm4, %v477_v25  ;;  %v470_v37 = vunpack.c.l.b16 %v430_v30  ;;  %v270_v38 = vor.u32 %v269_v26, %v266_v14  ;;  %v285_v39 = vrot.slane %v283_v27, 5  ;;  %v1300_v40 = vand.u32 %v2597_v17, %v2930_v4  ;;  %v3044_v26 = vld [vmem:[%s2932_s29 + $0x5c] sm:$0x1]  ;;  %v237_v27 = vld [vmem:[%s2932_s29 + $0xc] sm:$0xf] }
  0x2b   : > { %v280_v41 = vor.u32 %v279_v32, %v275_v31  ;;  %636 = vmatpush.bf16.msrb.mxu1 %v627_v33  ;;  %v336_v42 = vshrl.u32 %v241_v24, 16  ;;  %v339_v43 = vshll.u32 %v241_v24, 16  ;;  %v345_v44 = vshll.u32 %v3009_v29, 16 }
  0x2c   : > { %v479_v47 = vpack.c.b16 %v470_v37, %v469_v21  ;;  %v271_v48 = vrot.slane %v270_v38, 4  ;;  %1309 = vmatpush.bf16.msrb.mxu0 %v1300_v40  ;;  %v349_v49 = vshrl.u32 %v3009_v29, 16  ;;  %v355_v50 = vshll.u32 %v3015_v34, 16 }
  0x2d   : > { %v281_v51 = vrot.slane %v280_v41, 4  ;;  %v338_v52 = vrot.slane %v336_v42, 4  ;;  %v341_v53 = vrot.slane %v339_v43, 5  ;;  %v347_v54 = vrot.slane %v345_v44, 5  ;;  %v3054_v44 = vld [vmem:[%s2932_s29 + $0x10] sm:$0xf] }
  0x2e   : > { %2455 = vmatmul.msk.bf16.vlgmr.msra.gmra.mxu3 %vm481_vm4, %v479_v47  ;;  %v276_v56 = vsel %vm2969_vm5, %v271_v48, %v275_v31  ;;  %v351_v57 = vrot.slane %v349_v49, 4  ;;  %v357_v58 = vrot.slane %v355_v50, 5  ;;  %v384_v60 = vshrl.u32 %v245_v45, 16 }
  0x2f   : > { %v286_v61 = vsel %vm2969_vm5, %v281_v51, %v285_v39  ;;  %v457_v62 = vunpack.c.l.b16 %v276_v56  ;;  %v342_v63 = vor.u32 %v341_v53, %v338_v52  ;;  %v387_v0 = vshll.u32 %v245_v45, 16  ;;  %v3059_v56 = vld [vmem:[%s2932_s29 + $0x14] sm:$0x1] }
  0x30   : > { %v458_v3 = vunpack.c.l.b16 %v286_v61  ;;  %v352_v5 = vor.u32 %v351_v57, %v347_v54  ;;  %v386_v6 = vrot.slane %v384_v60, 4  ;;  %v393_v7 = vshll.u32 %v3024_v55, 16 }
  0x31   : > { %v343_v8 = vrot.slane %v342_v63, 4  ;;  %v389_v12 = vrot.slane %v387_v0, 5  ;;  %v397_v13 = vshrl.u32 %v3024_v55, 16  ;;  %v403_v14 = vshll.u32 %v3030_v59, 16 }
  0x32   : > { %v473_v15 = vpack.c.b16 %v458_v3, %v457_v62  ;;  %v353_v16 = vrot.slane %v352_v5, 4  ;;  %v395_v17 = vrot.slane %v393_v7, 5  ;;  %v432_v21 = vshrl.u32 %v249_v1, 16  ;;  %v678_v7 = vld [vmem:[%s2932_s29] sm:$0xe] }
  0x33   : > { %v348_v22 = vsel %vm2969_vm5, %v343_v8, %v347_v54  ;;  %v390_v23 = vor.u32 %v389_v12, %v386_v6  ;;  %v399_v24 = vrot.slane %v397_v13, 4  ;;  %v405_v25 = vrot.slane %v403_v14, 5 }
  0x34   : > { %2449 = vmatmul.msk.bf16.vlgmr.msra.gmra.mxu0 %vm481_vm4, %v473_v15  ;;  %v358_v30 = vsel %vm2969_vm5, %v353_v16, %v357_v58  ;;  %v463_v31 = vunpack.c.l.b16 %v348_v22  ;;  %v434_v32 = vrot.slane %v432_v21, 4  ;;  %v435_v33 = vshll.u32 %v249_v1, 16  ;;  %v2649_v15 = vld [vmem:[%s3707_s1 + $0xc] sm:$0x3] }
  0x35   : > { %v464_v37 = vunpack.c.l.b16 %v358_v30  ;;  %v391_v38 = vrot.slane %v390_v23, 4  ;;  %v400_v39 = vor.u32 %v399_v24, %v395_v17  ;;  %v441_v40 = vshll.u32 %v3039_v18, 16  ;;  %v2573_v16 = vld [vmem:[%s2932_s29 + $0xc] sm:$0xf] }
  0x36   : > { %v437_v41 = vrot.slane %v435_v33, 5  ;;  %v445_v42 = vshrl.u32 %v3039_v18, 16  ;;  %v451_v43 = vshll.u32 %v3044_v26, 16  ;;  %v288_v45 = vshrl.u32 %v237_v27, 16 }
  0x37   : > { %v476_v47 = vpack.c.b16 %v464_v37, %v463_v31  ;;  %v396_v48 = vsel %vm2969_vm5, %v391_v38, %v395_v17  ;;  %v401_v49 = vrot.slane %v400_v39, 4  ;;  %v443_v50 = vrot.slane %v441_v40, 5  ;;  %v3085_v40 = vld [vmem:[%s2932_s29 + $0x10] sm:$0xf] }
  0x38   : > { %v467_v51 = vunpack.c.l.b16 %v396_v48  ;;  %v438_v52 = vor.u32 %v437_v41, %v434_v32  ;;  %v447_v53 = vrot.slane %v445_v42, 4  ;;  %v453_v54 = vrot.slane %v451_v43, 5 }
  0x39   : > { %2452 = vmatmul.msk.bf16.gmra.mxu1 %vm481_vm4, %v476_v47  ;;  %v406_v57 = vsel %vm2969_vm5, %v401_v49, %v405_v25  ;;  %v290_v58 = vrot.slane %v288_v45, 4  ;;  %v291_v60 = vshll.u32 %v237_v27, 16  ;;  %v297_v61 = vshll.u32 %v3054_v44, 16  ;;  %v2714_v47 = vld [vmem:[%s3707_s1 + $0xe] sm:$0x3] }
  0x3a   : > { %v468_v62 = vunpack.c.l.b16 %v406_v57  ;;  %v439_v63 = vrot.slane %v438_v52, 4  ;;  %v448_v0 = vor.u32 %v447_v53, %v443_v50  ;;  %v301_v1 = vshrl.u32 %v3054_v44, 16 }
  0x3b   : > { %v293_v3 = vrot.slane %v291_v60, 5  ;;  %v299_v5 = vrot.slane %v297_v61, 5  ;;  %v307_v6 = vshll.u32 %v3059_v56, 16  ;;  %vm703_vm7 = vcmask 1046532   ;;  %v2739_v60 = vld [vmem:[%s3707_s1 + $0x10] sm:$0x3] }
  0x3c   : > { %v478_v8 = vpack.c.b16 %v468_v62, %v467_v51  ;;  %v444_v12 = vsel %vm2969_vm5, %v439_v63, %v443_v50  ;;  %v449_v13 = vrot.slane %v448_v0, 4  ;;  %v303_v14 = vrot.slane %v301_v1, 4  ;;  %vm3079_vm8 = vmor %vm702_vm6, %vm703_vm7 }
  0x3d   : > { %v471_v17 = vunpack.c.l.b16 %v444_v12  ;;  %v294_v21 = vor.u32 %v293_v3, %v290_v58  ;;  %v309_v22 = vrot.slane %v307_v6, 5  ;;  %v2497_v25 = vrot.slane %v678_v7, 9  ;;  %v2622_v58 = vld [vmem:[%s3707_s1 + $0xa] sm:$0x3] }
  0x3e   : > { %2454 = vmatmul.msk.bf16.gmra.mxu2 %vm481_vm4, %v478_v8  ;;  %v454_v23 = vsel %vm2969_vm5, %v449_v13, %v453_v54  ;;  %v304_v24 = vor.u32 %v303_v14, %v299_v5  ;;  %v707_v27 = vrot.slane %v2987_v2, 5  ;;  %v1660_v33 = vand.u32 %v2649_v15, %v2930_v4  ;;  %v3090_v2 = vld [vmem:[%s2932_s29 + $0x14] sm:$0x1]  ;;  %v2576_v13 = vld [vmem:[%s2932_s29 + $0x18] sm:$0xf] }
  0x3f   : > { %v472_v30 = vunpack.c.l.b16 %v454_v23  ;;  %v295_v31 = vrot.slane %v294_v21, 4  ;;  %v1058_v37 = vshrl.u32 %v2573_v16, 16  ;;  %v1061_v41 = vshll.u32 %v2573_v16, 16  ;;  %v3121_v16 = vld [vmem:[%s2932_s29 + $0x1c] sm:$0xf] }
  0x40   : > { %v305_v38 = vrot.slane %v304_v24, 4  ;;  %v709_v39 = vrot.slane %v707_v27, 4  ;;  %1669 = vmatpush.bf16.msra.mxu2 %v1660_v33  ;;  %v708_v50 = vsel %vm3079_vm8, %v2497_v25, %v707_v27  ;;  %v1067_v54 = vshll.u32 %v3085_v40, 16 }
  0x41   : > { %v480_v42 = vpack.c.b16 %v472_v30, %v471_v17  ;;  %v300_v43 = vsel %vm2969_vm5, %v295_v31, %v299_v5  ;;  %v1060_v45 = vrot.slane %v1058_v37, 4  ;;  %v1063_v51 = vrot.slane %v1061_v41, 5  ;;  %v680_v17 = vld [vmem:[%s2932_s29 + $0x18] sm:$0xe] }
  0x42   : > { %v310_v48 = vsel %vm2969_vm5, %v305_v38, %v309_v22  ;;  %v459_v49 = vunpack.c.l.b16 %v300_v43  ;;  %v711_v53 = vsel %vm3079_vm8, %v709_v39, %v710_v28  ;;  %v1071_v57 = vshrl.u32 %v3085_v40, 16  ;;  %v2751_v28 = vld [vmem:[%s2932_s29] sm:$0xff]  ;;  %v679_v22 = vld [vmem:[%s2932_s29 + $0xc] sm:$0xe] }
  0x43   : > { %2456 = vmatmul.msk.bf16.gmra.mxu3 %vm481_vm4, %v480_v42  ;;  %v460_v52 = vunpack.c.l.b16 %v310_v48  ;;  %v1064_v61 = vor.u32 %v1063_v51, %v1060_v45  ;;  %v1077_v62 = vshll.u32 %v3090_v2, 16  ;;  %v1994_v11 = vand.u32 %v2714_v47, %v2930_v4  ;;  %v2759_v45 = vld [vmem:[%s2932_s29 + $0xc] sm:$0xff] }
  0x44   : > { %v1069_v0 = vrot.slane %v1067_v54, 5  ;;  %v1073_v1 = vrot.slane %v1071_v57, 4  ;;  %v763_v3 = vunpack.c.l.b16 %v708_v50  ;;  %v764_v5 = vunpack.c.l.b16 %v711_v53  ;;  %v3140_v53 = vld [vmem:[%s2932_s29 + $0x20] sm:$0x1] }
  0x45   : > { %v474_v63 = vpack.c.b16 %v460_v52, %v459_v49  ;;  %2003 = vmatpush.bf16.msra.mxu3 %v1994_v11  ;;  %v1506_v6 = vand.u32 %v2622_v58, %v2930_v4  ;;  %v2200_v7 = vand.u32 %v2739_v60, %v2930_v4  ;;  %v1065_v8 = vrot.slane %v1064_v61, 4 }
  0x46   : > { %v1074_v12 = vor.u32 %v1073_v1, %v1069_v0  ;;  %v1079_v14 = vrot.slane %v1077_v62, 5  ;;  %v779_v21 = vpack.c.b16 %v764_v5, %v763_v3  ;;  %v714_v23 = vrot.slane %v3054_v44, 5  ;;  %v2579_v3 = vld [vmem:[%s2932_s29 + $0x24] sm:$0xf] }
  0x47   : > { %2450 = vmatmul.msk.bf16.gmra.mxu0 %vm481_vm4, %v474_v63  ;;  %1515 = vmatpush.bf16.msra.mxu1 %v1506_v6  ;;  %v1082_v4 = vshrl.u32 %v2576_v13, 16  ;;  %v1070_v24 = vsel %vm2969_vm5, %v1065_v8, %v1069_v0  ;;  %v1085_v25 = vshll.u32 %v2576_v13, 16  ;;  %v1091_v30 = vshll.u32 %v3121_v16, 16  ;;  %v2752_v63 = vld [vmem:[%s2932_s29 + $0xc] sm:$0xff]  ;;  %v681_v8 = vld [vmem:[%s2932_s29 + $0x24] sm:$0xe] }
  0x48   : > { %2209 = vmatpush.bf16.msra.mxu0 %v2200_v7  ;;  %v1075_v15 = vrot.slane %v1074_v12, 4  ;;  %v1095_v31 = vshrl.u32 %v3121_v16, 16  ;;  %v2499_v33 = vrot.slane %v680_v17, 9  ;;  %v2498_v37 = vrot.slane %v679_v22, 9  ;;  %v3154_v7 = vld [vmem:[%s2932_s29 + $0x28] sm:$0xf] }
  0x49   : > { %2489 = vmatmul.msk.bf16.vlgmr.msrb.gmra.mxu1 %vm481_vm4, %v2751_v28  ;;  %v721_v38 = vrot.slane %v2943_v9, 5  ;;  %v724_v44 = vrot.slane %v2946_v10, 5  ;;  %v1251_v39 = vunpack.c.l.b16 %v1070_v24  ;;  %v716_v41 = vrot.slane %v714_v23, 4 }
  0x4a   : > { %v1080_v27 = vsel %vm2969_vm5, %v1075_v15, %v1079_v14  ;;  %v717_v42 = vrot.slane %v3059_v56, 5  ;;  %v1084_v43 = vrot.slane %v1082_v4, 4  ;;  %v1087_v48 = vrot.slane %v1085_v25, 5 }
  0x4b   : > { %v1252_v47 = vunpack.c.l.b16 %v1080_v27  ;;  %v722_v49 = vsel %vm3079_vm8, %v2499_v33, %v721_v38  ;;  %v723_v50 = vrot.slane %v721_v38, 4  ;;  %v1093_v51 = vrot.slane %v1091_v30, 5 }
  0x4c   : > { %v1097_v52 = vrot.slane %v1095_v31, 4  ;;  %v767_v9 = vunpack.c.l.b16 %v722_v49  ;;  %v715_v57 = vsel %vm3079_vm8, %v2498_v37, %v714_v23  ;;  %v718_v58 = vsel %vm3079_vm8, %v716_v41, %v717_v42  ;;  %v2760_v37 = vld [vmem:[%s2932_s29 + $0x18] sm:$0xff]  ;;  %v3173_v42 = vld [vmem:[%s2932_s29 + $0x2c] sm:$0x1] }
  0x4d   : > { %v725_v10 = vsel %vm3079_vm8, %v723_v50, %v724_v44  ;;  %v1267_v56 = vpack.c.b16 %v1252_v47, %v1251_v39  ;;  %v1088_v60 = vor.u32 %v1087_v48, %v1084_v43  ;;  %v1101_v62 = vshll.u32 %v3140_v53, 16  ;;  %v2753_v50 = vld [vmem:[%s2932_s29 + $0x18] sm:$0xff] }
  0x4e   : > { %2506 = vmatmul.msk.bf16.vlgmr.msrb.gmra.mxu2 %vm481_vm4, %v779_v21  ;;  %v768_v54 = vunpack.c.l.b16 %v725_v10  ;;  %v1098_v61 = vor.u32 %v1097_v52, %v1093_v51  ;;  %v765_v28 = vunpack.c.l.b16 %v715_v57  ;;  %v766_v0 = vunpack.c.l.b16 %v718_v58  ;;  %v2582_v10 = vld [vmem:[%s2932_s29 + $0x30] sm:$0xf] }
  0x4f   : > { %v1089_v1 = vrot.slane %v1088_v60, 4  ;;  %v1103_v6 = vrot.slane %v1101_v62, 5  ;;  %v728_v12 = vrot.slane %v3009_v29, 5  ;;  %v731_v13 = vrot.slane %v3015_v34, 5 }
  0x50   : > { %v781_v11 = vpack.c.b16 %v768_v54, %v767_v9  ;;  %v1099_v5 = vrot.slane %v1098_v61, 4  ;;  %v780_v14 = vpack.c.b16 %v766_v0, %v765_v28  ;;  %v1106_v15 = vshrl.u32 %v2579_v3, 16  ;;  %v3182_v54 = vld [vmem:[%s2932_s29 + $0x34] sm:$0xf] }
  0x51   : > { %v1109_v17 = vshll.u32 %v2579_v3, 16  ;;  %v2500_v21 = vrot.slane %v681_v8, 9  ;;  %v1094_v22 = vsel %vm2969_vm5, %v1089_v1, %v1093_v51  ;;  %v1115_v23 = vshll.u32 %v3154_v7, 16  ;;  %v3193_v8 = vld [vmem:[%s2932_s29 + $0x38] sm:$0x1] }
  0x52   : > { %v1119_v4 = vshrl.u32 %v3154_v7, 16  ;;  %v730_v24 = vrot.slane %v728_v12, 4  ;;  %v1104_v25 = vsel %vm2969_vm5, %v1099_v5, %v1103_v6  ;;  %v1253_v30 = vunpack.c.l.b16 %v1094_v22 }
  0x53   : > { %2565 = vmatmul.msk.bf16.vlgmr.msrb.gmra.mxu3 %vm481_vm4, %v2759_v45  ;;  %v729_v29 = vsel %vm3079_vm8, %v2500_v21, %v728_v12  ;;  %v1108_v31 = vrot.slane %v1106_v15, 4  ;;  %v1254_v38 = vunpack.c.l.b16 %v1104_v25  ;;  %v1111_v44 = vrot.slane %v1109_v17, 5  ;;  %v2585_v17 = vld [vmem:[%s2932_s29 + $0x3c] sm:$0xf]  ;;  %v3201_v21 = vld [vmem:[%s2932_s29 + $0x40] sm:$0xf] }
  0x54   : > { %v732_v34 = vsel %vm3079_vm8, %v730_v24, %v731_v13  ;;  %v769_v27 = vunpack.c.l.b16 %v729_v29  ;;  %v1117_v39 = vrot.slane %v1115_v23, 5  ;;  %v1121_v41 = vrot.slane %v1119_v4, 4  ;;  %v682_v24 = vld [vmem:[%s2932_s29 + $0x30] sm:$0xe] }
  0x55   : > { %v770_v33 = vunpack.c.l.b16 %v732_v34  ;;  %v1268_v45 = vpack.c.b16 %v1254_v38, %v1253_v30  ;;  %v1112_v47 = vor.u32 %v1111_v44, %v1108_v31  ;;  %v1125_v49 = vshll.u32 %v3173_v42, 16 }
  0x56   : > { %v1122_v48 = vor.u32 %v1121_v41, %v1117_v39  ;;  %v1130_v58 = vshrl.u32 %v2582_v10, 16  ;;  %v1133_v60 = vshll.u32 %v2582_v10, 16  ;;  %v1139_v61 = vshll.u32 %v3182_v54, 16 }
  0x57   : > { %2598 = vmatmul.msk.bf16.vlgmr.msrb.gmra.mxu0 %vm481_vm4, %v1267_v56  ;;  %v782_v43 = vpack.c.b16 %v770_v33, %v769_v27  ;;  %v1113_v51 = vrot.slane %v1112_v47, 4  ;;  %v1127_v9 = vrot.slane %v1125_v49, 5  ;;  %v1143_v62 = vshrl.u32 %v3182_v54, 16 }
  0x58   : > { %v1123_v52 = vrot.slane %v1122_v48, 4  ;;  %v1132_v1 = vrot.slane %v1130_v58, 4  ;;  %v1135_v3 = vrot.slane %v1133_v60, 5  ;;  %v1141_v5 = vrot.slane %v1139_v61, 5 }
  0x59   : > { %2490 = vmatmul.msk.bf16.gmra.mxu1 %vm481_vm4, %v2752_v63  ;;  %v1118_v56 = vsel %vm2969_vm5, %v1113_v51, %v1117_v39  ;;  %v2761_v63 = vld [vmem:[%s2932_s29 + $0x24] sm:$0xff]  ;;  %v1145_v6 = vrot.slane %v1143_v62, 4  ;;  %v1149_v15 = vshll.u32 %v3193_v8, 16  ;;  %v1154_v25 = vshrl.u32 %v2585_v17, 16 }
  0x5a   : > { %v1128_v57 = vsel %vm2969_vm5, %v1123_v52, %v1127_v9  ;;  %v1255_v28 = vunpack.c.l.b16 %v1118_v56  ;;  %v1136_v13 = vor.u32 %v1135_v3, %v1132_v1  ;;  %v1157_v29 = vshll.u32 %v2585_v17, 16 }
  0x5b   : > { %v1256_v0 = vunpack.c.l.b16 %v1128_v57  ;;  %v1151_v4 = vrot.slane %v1149_v15, 5  ;;  %v1163_v34 = vshll.u32 %v3201_v21, 16  ;;  %v1167_v27 = vshrl.u32 %v3201_v21, 16  ;;  %v2755_v57 = vld [vmem:[%s2932_s29 + $0x30] sm:$0xff] }
  0x5c   : > { %v1137_v22 = vrot.slane %v1136_v13, 4  ;;  %v735_v30 = vrot.slane %v2955_v19, 5  ;;  %v1156_v38 = vrot.slane %v1154_v25, 4  ;;  %v1159_v44 = vrot.slane %v1157_v29, 5 }
  0x5d   : > { %v1269_v12 = vpack.c.b16 %v1256_v0, %v1255_v28  ;;  %v1165_v39 = vrot.slane %v1163_v34, 5  ;;  %v1169_v41 = vrot.slane %v1167_v27, 4  ;;  %v738_v19 = vrot.slane %v2958_v20, 5  ;;  %v3228_v28 = vld [vmem:[%s2932_s29 + $0x4c] sm:$0xf] }
  0x5e   : > { %2507 = vmatmul.msk.bf16.gmra.mxu2 %vm481_vm4, %v780_v14  ;;  %v1146_v14 = vor.u32 %v1145_v6, %v1141_v5  ;;  %v1142_v31 = vsel %vm2969_vm5, %v1137_v22, %v1141_v5  ;;  %v737_v49 = vrot.slane %v735_v30, 4  ;;  %v1160_v52 = vor.u32 %v1159_v44, %v1156_v38  ;;  %v683_v6 = vld [vmem:[%s2932_s29 + $0x3c] sm:$0xe]  ;;  %v3243_v27 = vld [vmem:[%s2932_s29 + $0x50] sm:$0x1] }
  0x5f   : > { %v1257_v47 = vunpack.c.l.b16 %v1142_v31  ;;  %v742_v5 = vrot.slane %v3024_v55, 5  ;;  %v1191_v15 = vshrl.u32 %v3228_v28, 16  ;;  %v2502_v22 = vrot.slane %v683_v6, 9  ;;  %v2756_v44 = vld [vmem:[%s2932_s29 + $0x3c] sm:$0xff] }
  0x60   : > { %v1147_v23 = vrot.slane %v1146_v14, 4  ;;  %v739_v56 = vsel %vm3079_vm8, %v737_v49, %v738_v19  ;;  %v1161_v60 = vrot.slane %v1160_v52, 4  ;;  %v1187_v14 = vshll.u32 %v3228_v28, 16  ;;  %v2591_v49 = vld [vmem:[%s2932_s29 + $0x54] sm:$0xf] }
  0x61   : > { %v772_v58 = vunpack.c.l.b16 %v739_v56  ;;  %v1193_v34 = vrot.slane %v1191_v15, 4  ;;  %v743_v31 = vsel %vm3079_vm8, %v2502_v22, %v742_v5  ;;  %v1197_v38 = vshll.u32 %v3243_v27, 16  ;;  %v3256_v19 = vld [vmem:[%s2932_s29 + $0x58] sm:$0xf] }
  0x62   : > { %v1152_v33 = vsel %vm2969_vm5, %v1147_v23, %v1151_v4  ;;  %v1166_v1 = vsel %vm2969_vm5, %v1161_v60, %v1165_v39  ;;  %v744_v23 = vrot.slane %v742_v5, 4  ;;  %v745_v4 = vrot.slane %v3030_v59, 5 }
  0x63   : > { %2566 = vmatmul.msk.bf16.gmra.mxu3 %vm481_vm4, %v2760_v37  ;;  %v2501_v37 = vrot.slane %v682_v24, 9  ;;  %v1258_v48 = vunpack.c.l.b16 %v1152_v33  ;;  %v2763_v24 = vld [vmem:[%s2932_s29 + $0x3c] sm:$0xff]  ;;  %v1189_v29 = vrot.slane %v1187_v14, 5  ;;  %v1202_v52 = vshrl.u32 %v2591_v49, 16 }
  0x64   : > { %v746_v33 = vsel %vm3079_vm8, %v744_v23, %v745_v4  ;;  %v1205_v56 = vshll.u32 %v2591_v49, 16  ;;  %v2757_v23 = vld [vmem:[%s2932_s29 + $0x48] sm:$0xff] }
  0x65   : > { %v736_v51 = vsel %vm3079_vm8, %v2501_v37, %v735_v30  ;;  %v1270_v10 = vpack.c.b16 %v1258_v48, %v1257_v47  ;;  %v1194_v59 = vor.u32 %v1193_v34, %v1189_v29  ;;  %v1199_v48 = vrot.slane %v1197_v38, 5 }
  0x66   : > { %v771_v20 = vunpack.c.l.b16 %v736_v51  ;;  %v1207_v5 = vrot.slane %v1205_v56, 5  ;;  %v756_v38 = vrot.slane %v3039_v18, 5  ;;  %v759_v56 = vrot.slane %v3044_v26, 5 }
  0x67   : > { %2599 = vmatmul.msk.bf16.gmra.mxu0 %vm481_vm4, %v1268_v45  ;;  %v2762_v45 = vld [vmem:[%s2932_s29 + $0x30] sm:$0xff]  ;;  %v1195_v47 = vrot.slane %v1194_v59, 4 }
  0x68   : > { %v783_v0 = vpack.c.b16 %v772_v58, %v771_v20  ;;  %v1211_v20 = vshll.u32 %v3256_v19, 16  ;;  %v1215_v58 = vshrl.u32 %v3256_v19, 16 }
  0x69   : > { %2491 = vmatmul.msk.bf16.gmra.mxu1 %vm481_vm4, %v2753_v50  ;;  %v3216_v50 = vld [vmem:[%s2932_s29 + $0x44] sm:$0x1] }
  0x6a   : > { %v1173_v9 = vshll.u32 %v3216_v50, 16  ;;  %v1217_v6 = vrot.slane %v1215_v58, 4 }
  0x6c   : > { %v1175_v62 = vrot.slane %v1173_v9, 5  ;;  %v1200_v9 = vsel %vm2969_vm5, %v1195_v47, %v1199_v48 }
  0x6e   : > { %2508 = vmatmul.msk.bf16.gmra.mxu2 %vm481_vm4, %v781_v11  ;;  %v2754_v11 = vld [vmem:[%s2932_s29 + $0x24] sm:$0xff] }
  0x73   : > { %2567 = vmatmul.msk.bf16.gmra.mxu3 %vm481_vm4, %v2761_v63  ;;  %v2588_v63 = vld [vmem:[%s2932_s29 + $0x48] sm:$0xf] }
  0x74   : > { %v1181_v13 = vshll.u32 %v2588_v63, 16 }
  0x76   : > { %v1183_v55 = vrot.slane %v1181_v13, 5 }
  0x77   : > { %2600 = vmatmul.msk.bf16.gmra.mxu0 %vm481_vm4, %v1269_v12  ;;  %v1178_v12 = vshrl.u32 %v2588_v63, 16  ;;  %v2764_v63 = vld [vmem:[%s2932_s29 + $0x48] sm:$0xff] }
  0x79   : > { %2492 = vmatmul.msk.bf16.gmra.mxu1 %vm481_vm4, %v2754_v11  ;;  %v1259_v11 = vunpack.c.l.b16 %v1166_v1  ;;  %v1180_v25 = vrot.slane %v1178_v12, 4  ;;  %v3270_v12 = vld [vmem:[%s2932_s29 + $0x5c] sm:$0x1] }
  0x7a   : > { %v1221_v22 = vshll.u32 %v3270_v12, 16 }
  0x7b   : > { %v1184_v37 = vor.u32 %v1183_v55, %v1180_v25  ;;  %v2594_v55 = vld [vmem:[%s2932_s29 + $0x60] sm:$0xf] }
  0x7c   : > { %v1223_v34 = vrot.slane %v1221_v22, 5 }
  0x7e   : > { %2509 = vmatmul.msk.bf16.gmra.mxu2 %vm481_vm4, %v782_v43  ;;  %v1170_v43 = vor.u32 %v1169_v41, %v1165_v39  ;;  %v773_v39 = vunpack.c.l.b16 %v743_v31  ;;  %v774_v41 = vunpack.c.l.b16 %v746_v33  ;;  %v1226_v33 = vshrl.u32 %v2594_v55, 16 }
  0x80   : > { %v1171_v61 = vrot.slane %v1170_v43, 4  ;;  %v784_v51 = vpack.c.b16 %v774_v41, %v773_v39  ;;  %v685_v41 = vld [vmem:[%s2932_s29 + $0x54] sm:$0xe] }
  0x82   : > { %v1176_v3 = vsel %vm2969_vm5, %v1171_v61, %v1175_v62  ;;  %v1262_v61 = vunpack.c.l.b16 %v1200_v9  ;;  %v1204_v62 = vrot.slane %v1202_v52, 4  ;;  %v2504_v9 = vrot.slane %v685_v41, 9 }
  0x83   : > { %2568 = vmatmul.msk.bf16.gmra.mxu3 %vm481_vm4, %v2762_v45  ;;  %v1260_v17 = vunpack.c.l.b16 %v1176_v3  ;;  %v1185_v45 = vrot.slane %v1184_v37, 4  ;;  %v752_v3 = vrot.slane %v2974_v46, 5  ;;  %v1229_v37 = vshll.u32 %v2594_v55, 16 }
  0x85   : > { %v1271_v30 = vpack.c.b16 %v1260_v17, %v1259_v11  ;;  %v1190_v43 = vsel %vm2969_vm5, %v1185_v45, %v1189_v29  ;;  %v1208_v17 = vor.u32 %v1207_v5, %v1204_v62  ;;  %v1231_v52 = vrot.slane %v1229_v37, 5  ;;  %v2690_v5 = vld [vmem:[%s2932_s29 + $0x18] sm:$0xf] }
  0x86   : > { %v1261_v60 = vunpack.c.l.b16 %v1190_v43  ;;  %v2765_v43 = vld [vmem:[%s2932_s29 + $0x54] sm:$0xff] }
  0x87   : > { %2601 = vmatmul.msk.bf16.gmra.mxu0 %vm481_vm4, %v1270_v10  ;;  %v749_v10 = vrot.slane %v2965_v35, 5  ;;  %v1213_v35 = vrot.slane %v1211_v20, 5  ;;  %v1209_v25 = vrot.slane %v1208_v17, 4 }
  0x88   : > { %v1272_v13 = vpack.c.b16 %v1262_v61, %v1261_v60  ;;  %v3305_v60 = vld [vmem:[%s2932_s29 + $0x68] sm:$0x1] }
  0x89   : > { %2493 = vmatmul.msk.bf16.gmra.mxu1 %vm481_vm4, %v2755_v57  ;;  %v684_v57 = vld [vmem:[%s2932_s29 + $0x48] sm:$0xe]  ;;  %v751_v1 = vrot.slane %v749_v10, 4  ;;  %v1218_v46 = vor.u32 %v1217_v6, %v1213_v35  ;;  %v1214_v59 = vsel %vm2969_vm5, %v1209_v25, %v1213_v35  ;;  %v3317_v35 = vld [vmem:[%s2932_s29 + $0x1c] sm:$0xf]  ;;  %v2758_v6 = vld [vmem:[%s2932_s29 + $0x54] sm:$0xff] }
  0x8a   : > { %v1263_v49 = vunpack.c.l.b16 %v1214_v59  ;;  %v1761_v25 = vshll.u32 %v3317_v35, 16  ;;  %v1765_v55 = vshrl.u32 %v3317_v35, 16 }
  0x8b   : > { %v753_v11 = vsel %vm3079_vm8, %v751_v1, %v752_v3  ;;  %v1219_v29 = vrot.slane %v1218_v46, 4  ;;  %v1245_v3 = vshll.u32 %v3305_v60, 16  ;;  %v1401_v46 = vrot.slane %v3085_v40, 5 }
  0x8e   : > { %2510 = vmatmul.msk.bf16.gmra.mxu2 %vm481_vm4, %v783_v0  ;;  %v2503_v0 = vrot.slane %v684_v57, 9 }
  0x90   : > { %v750_v15 = vsel %vm3079_vm8, %v2503_v0, %v749_v10  ;;  %v758_v10 = vrot.slane %v756_v38, 4  ;;  %v757_v0 = vsel %vm3079_vm8, %v2504_v9, %v756_v38  ;;  %v1403_v38 = vrot.slane %v1401_v46, 4 }
  0x91   : > { %v775_v4 = vunpack.c.l.b16 %v750_v15  ;;  %v777_v15 = vunpack.c.l.b16 %v757_v0 }
  0x92   : > { %v760_v1 = vsel %vm3079_vm8, %v758_v10, %v759_v56  ;;  %v2766_v10 = vld [vmem:[%s2932_s29 + $0x60] sm:$0xff] }
  0x93   : > { %2569 = vmatmul.msk.bf16.gmra.mxu3 %vm481_vm4, %v2763_v24  ;;  %v776_v24 = vunpack.c.l.b16 %v753_v11  ;;  %v778_v11 = vunpack.c.l.b16 %v760_v1 }
  0x95   : > { %v785_v31 = vpack.c.b16 %v776_v24, %v775_v4  ;;  %v1752_v4 = vshrl.u32 %v2690_v5, 16  ;;  %v1755_v24 = vshll.u32 %v2690_v5, 16  ;;  %v786_v40 = vpack.c.b16 %v778_v11, %v777_v15 }
  0x97   : > { %2602 = vmatmul.msk.bf16.gmra.mxu0 %vm481_vm4, %v1271_v30  ;;  %v3285_v30 = vld [vmem:[%s2932_s29 + $0x64] sm:$0xf]  ;;  %v1757_v41 = vrot.slane %v1755_v24, 5 }
  0x98   : > { %v1235_v45 = vshll.u32 %v3285_v30, 16  ;;  %v1239_v47 = vshrl.u32 %v3285_v30, 16 }
  0x99   : > { %2494 = vmatmul.msk.bf16.gmra.mxu1 %vm481_vm4, %v2756_v44  ;;  %v1224_v44 = vsel %vm2969_vm5, %v1219_v29, %v1223_v34  ;;  %v1247_v34 = vrot.slane %v1245_v3, 5  ;;  %v3352_v3 = vld [vmem:[%s2932_s29 + $0x28] sm:$0xf] }
  0x9a   : > { %v1264_v18 = vunpack.c.l.b16 %v1224_v44  ;;  %v1237_v57 = vrot.slane %v1235_v45, 5  ;;  %v1241_v20 = vrot.slane %v1239_v47, 4  ;;  %v1754_v44 = vrot.slane %v1752_v4, 4 }
  0x9b   : > { %v1763_v45 = vrot.slane %v1761_v25, 5  ;;  %v1767_v47 = vrot.slane %v1765_v55, 4  ;;  %v1785_v55 = vshll.u32 %v3352_v3, 16 }
  0x9c   : > { %v1242_v26 = vor.u32 %v1241_v20, %v1237_v57 }
  0x9d   : > { %v1768_v20 = vor.u32 %v1767_v47, %v1763_v45 }
  0x9e   : > { %2511 = vmatmul.msk.bf16.gmra.mxu2 %vm481_vm4, %v784_v51  ;;  %v1228_v51 = vrot.slane %v1226_v33, 4  ;;  %v1243_v29 = vrot.slane %v1242_v26, 4  ;;  %v2693_v26 = vld [vmem:[%s2932_s29 + $0x24] sm:$0xf] }
  0x9f   : > { %v1769_v15 = vrot.slane %v1768_v20, 4  ;;  %v1776_v4 = vshrl.u32 %v2693_v26, 16  ;;  %v1779_v24 = vshll.u32 %v2693_v26, 16 }
  0xa0   : > { %v1232_v62 = vor.u32 %v1231_v52, %v1228_v51  ;;  %v2692_v51 = vld [vmem:[%s2932_s29 + $0x20] sm:$0x1] }
  0xa1   : > { %v2098_v47 = vrot.slane %v2692_v51, 5 }
  0xa2   : > { %v1233_v17 = vrot.slane %v1232_v62, 4  ;;  %v1771_v62 = vshll.u32 %v2692_v51, 16 }
  0xa3   : > { %2570 = vmatmul.msk.bf16.gmra.mxu3 %vm481_vm4, %v2764_v63  ;;  %v3273_v14 = vpop.f32.mrf.mxu1  ;;  %v1273_v63 = vpack.c.b16 %v1264_v18, %v1263_v49 }
  0xa4   : > { %v1238_v37 = vsel %vm2969_vm5, %v1233_v17, %v1237_v57  ;;  %v1758_v57 = vor.u32 %v1757_v41, %v1754_v44  ;;  %v1773_v11 = vrot.slane %v1771_v62, 5  ;;  %v2607_v44 = vld [vmem:[%s2932_s29 + $0x18] sm:$0xe] }
  0xa5   : > { %v1265_v52 = vunpack.c.l.b16 %v1238_v37 }
  0xa7   : > { %2603 = vmatmul.msk.bf16.gmra.mxu0 %vm481_vm4, %v1272_v13 }
  0xa9   : > { %2495 = vmatmul.msk.bf16.gmra.mxu1 %vm481_vm4, %v2757_v23  ;;  %v2606_v23 = vld [vmem:[%s2932_s29 + $0xc] sm:$0xe] }
  0xaa   : > { %v2614_v59 = vrot.slane %v2606_v23, 9  ;;  %v2095_v23 = vrot.slane %v3317_v35, 5 }
  0xab   : > { %v3292_v39 = vpop.f32.mrf.mxu1 }
  0xac   : > { %v1402_v18 = vsel %vm3079_vm8, %v2614_v59, %v1401_v46  ;;  %v2723_v46 = vld [vmem:[%s2932_s29 + $0x18] sm:$0xe]  ;;  %v1774_v59 = vsel %vm2969_vm5, %v1769_v15, %v1773_v11  ;;  %v2097_v41 = vrot.slane %v2095_v23, 4 }
  0xad   : > { %v3297_v48 = vpop.f32.mrf.mxu2  ;;  %v1457_v0 = vunpack.c.l.b16 %v1402_v18  ;;  %v1946_v62 = vunpack.c.l.b16 %v1774_v59 }
  0xae   : > { %2512 = vmatmul.msk.bf16.gmra.mxu2 %vm481_vm4, %v785_v31  ;;  %v1404_v31 = vrot.slane %v3090_v2, 5  ;;  %v1248_v2 = vsel %vm2969_vm5, %v1243_v29, %v1247_v34  ;;  %v1789_v29 = vshrl.u32 %v3352_v3, 16 }
  0xaf   : > { %v1266_v56 = vunpack.c.l.b16 %v1248_v2  ;;  %v1778_v2 = vrot.slane %v1776_v4, 4 }
  0xb0   : > { %v1405_v9 = vsel %vm3079_vm8, %v1403_v38, %v1404_v31  ;;  %v2731_v38 = vrot.slane %v2723_v46, 9 }
  0xb1   : > { %v3302_v58 = vpop.f32.mrf.mxu0  ;;  %v3307_v61 = vpop.f32.mrf.mxu3  ;;  %v1458_v1 = vunpack.c.l.b16 %v1405_v9  ;;  %v1274_v5 = vpack.c.b16 %v1266_v56, %v1265_v52  ;;  %v1781_v52 = vrot.slane %v1779_v24, 5  ;;  %v1791_v9 = vrot.slane %v1789_v29, 4 }
  0xb2   : > { %v2096_v51 = vsel %vm3079_vm8, %v2731_v38, %v2095_v23 }
  0xb3   : > { %2571 = vmatmul.msk.bf16.gmra.mxu3 %vm481_vm4, %v2765_v43  ;;  %v1473_v25 = vpack.c.b16 %v1458_v1, %v1457_v0  ;;  %v2099_v1 = vsel %vm3079_vm8, %v2097_v41, %v2098_v47  ;;  %v1782_v26 = vor.u32 %v1781_v52, %v1778_v2  ;;  %v2151_v4 = vunpack.c.l.b16 %v2096_v51  ;;  %v2724_v41 = vld [vmem:[%s2932_s29 + $0x24] sm:$0xe] }
  0xb4   : > { %v2152_v24 = vunpack.c.l.b16 %v2099_v1  ;;  %v2102_v47 = vrot.slane %v3352_v3, 5  ;;  %v1415_v51 = vrot.slane %v3154_v7, 5 }
  0xb5   : > { %v3324_v22 = vpop.f32.mrf.mxu2 }
  0xb6   : > { %v3320_v13 = vpop.f32.mrf.mxu1  ;;  %v2167_v2 = vpack.c.b16 %v2152_v24, %v2151_v4  ;;  %v2104_v3 = vrot.slane %v2102_v47, 4 }
  0xb7   : > { %2604 = vmatmul.msk.bf16.gmra.mxu0 %vm481_vm4, %v1273_v63 }
  0xb9   : > { %2496 = vmatmul.msk.bf16.gmra.mxu1 %vm481_vm4, %v2758_v6  ;;  %v3331_v33 = vpop.f32.mrf.mxu0  ;;  %v3335_v49 = vpop.f32.mrf.mxu3  ;;  %v1759_v6 = vrot.slane %v1758_v57, 4  ;;  %v3377_v57 = vld [vmem:[%s2932_s29 + $0x2c] sm:$0x1] }
  0xbb   : > { %v1764_v35 = vsel %vm2969_vm5, %v1759_v6, %v1763_v45  ;;  %v1411_v45 = vrot.slane %v3140_v53, 5  ;;  %v1795_v6 = vshll.u32 %v3377_v57, 16 }
  0xbc   : > { %v1945_v20 = vunpack.c.l.b16 %v1764_v35 }
  0xbd   : > { %v1797_v38 = vrot.slane %v1795_v6, 5 }
  0xbe   : > { %2513 = vmatmul.msk.bf16.gmra.mxu2 %vm481_vm4, %v786_v40  ;;  %v3341_v43 = vpop.f32.mrf.mxu1  ;;  %v1408_v40 = vrot.slane %v3121_v16, 5  ;;  %v1787_v16 = vrot.slane %v1785_v55, 5  ;;  %v1961_v23 = vpack.c.b16 %v1946_v62, %v1945_v20  ;;  %v1783_v55 = vrot.slane %v1782_v26, 4 }
  0xbf   : > { %v2105_v62 = vrot.slane %v3377_v57, 5 }
  0xc0   : > { %v1410_v56 = vrot.slane %v1408_v40, 4 }
  0xc1   : > { %v3348_v63 = vpop.f32.mrf.mxu2 }
  0xc2   : > { %v1412_v46 = vsel %vm3079_vm8, %v1410_v56, %v1411_v45  ;;  %v2732_v56 = vrot.slane %v2724_v41, 9  ;;  %v3422_v41 = vld [vmem:[%s2932_s29 + $0x38] sm:$0x1] }
  0xc3   : > { %2572 = vmatmul.msk.bf16.gmra.mxu3 %vm481_vm4, %v2766_v10  ;;  %v2615_v10 = vrot.slane %v2607_v44, 9  ;;  %v1460_v35 = vunpack.c.l.b16 %v1412_v46 }
  0xc4   : > { %v3355_v17 = vpop.f32.mrf.mxu0  ;;  %v2103_v57 = vsel %vm3079_vm8, %v2732_v56, %v2102_v47 }
  0xc5   : > { %v1409_v11 = vsel %vm3079_vm8, %v2615_v10, %v1408_v40  ;;  %v2696_v40 = vld [vmem:[%s2932_s29 + $0x30] sm:$0xf] }
  0xc6   : > { %v3361_v34 = vpop.f32.mrf.mxu3  ;;  %v638_v31 = vpop.f32.mrf.mxu1  ;;  %v1803_v1 = vshll.u32 %v2696_v40, 16 }
  0xc7   : > { %2605 = vmatmul.msk.bf16.gmra.mxu0 %vm481_vm4, %v1274_v5  ;;  %v639_v37 = vadd.f32 %v638_v31, %v3302_v58  ;;  %v2767_v58 = vld [vmem:[%s2932_s29 + $0x18] sm:$0xff]  ;;  %v1792_v5 = vor.u32 %v1791_v9, %v1787_v16  ;;  %v1459_v31 = vunpack.c.l.b16 %v1409_v11  ;;  %v1788_v9 = vsel %vm2969_vm5, %v1783_v55, %v1787_v16  ;;  %v2768_v55 = vld [vmem:[%s2932_s29 + $0x24] sm:$0xff] }
  0xc8   : > { %v1418_v11 = vrot.slane %v3173_v42, 5  ;;  %v1947_v46 = vunpack.c.l.b16 %v1788_v9  ;;  %v2106_v42 = vsel %vm3079_vm8, %v2104_v3, %v2105_v62 }
  0xc9   : > { %v3371_v18 = vpop.f32.mrf.mxu2  ;;  %2623 = vmatmul.msk.bf16.vlgmr.msra.gmra.mxu1 %vm481_vm4, %v1473_v25  ;;  %v1793_v59 = vrot.slane %v1792_v5, 4  ;;  %v2608_v5 = vld [vmem:[%s2932_s29 + $0x24] sm:$0xe] }
  0xcb   : > { %v1798_v10 = vsel %vm2969_vm5, %v1793_v59, %v1797_v38 }
  0xcc   : > { %v3379_v0 = vpop.f32.mrf.mxu0  ;;  %v1948_v7 = vunpack.c.l.b16 %v1798_v10 }
  0xce   : > { %v3386_v15 = vpop.f32.mrf.mxu3  ;;  %2682 = vmatmul.msk.bf16.vlgmr.msra.gmra.mxu2 %vm481_vm4, %v2767_v58  ;;  %v640_v53 = vpop.f32.mrf.mxu1  ;;  %v1474_v58 = vpack.c.b16 %v1460_v35, %v1459_v31  ;;  %v1417_v31 = vrot.slane %v1415_v51, 4  ;;  %v1805_v35 = vrot.slane %v1803_v1, 5 }
  0xcf   : > { %v641_v25 = vadd.f32 %v640_v53, %v3331_v33  ;;  %v3401_v33 = vld [vmem:[%s2932_s29 + $0x34] sm:$0xf] }
  0xd0   : > { %v1809_v6 = vshll.u32 %v3401_v33, 16  ;;  %v1813_v53 = vshrl.u32 %v3401_v33, 16 }
  0xd1   : > { %v823_v29 = vpop.f32.mrf.mxu2 }
  0xd2   : > { %v863_v44 = vadd.f32 %v823_v29, %v639_v37  ;;  %v1800_v37 = vshrl.u32 %v2696_v40, 16  ;;  %v2616_v29 = vrot.slane %v2608_v5, 9  ;;  %v1811_v59 = vrot.slane %v1809_v6, 5 }
  0xd3   : > { %2715 = vmatmul.msk.bf16.vlgmr.msra.gmra.mxu3 %vm481_vm4, %v1961_v23  ;;  %v1815_v38 = vrot.slane %v1813_v53, 4  ;;  %v1962_v40 = vpack.c.b16 %v1948_v7, %v1947_v46  ;;  %v3433_v53 = vld [vmem:[%s2932_s29 + $0x40] sm:$0xf]  ;;  %v2725_v7 = vld [vmem:[%s2932_s29 + $0x30] sm:$0xe] }
  0xd4   : > { %v1311_v52 = vpop.f32.mrf.mxu0  ;;  %v1802_v4 = vrot.slane %v1800_v37, 4  ;;  %v1416_v9 = vsel %vm3079_vm8, %v2616_v29, %v1415_v51  ;;  %v1837_v29 = vshrl.u32 %v3433_v53, 16 }
  0xd5   : > { %v1461_v62 = vunpack.c.l.b16 %v1416_v9 }
  0xd6   : > { %v977_v45 = vpop.f32.mrf.mxu3  ;;  %v643_v20 = vpop.f32.mrf.mxu1  ;;  %v1806_v10 = vor.u32 %v1805_v35, %v1802_v4 }
  0xd7   : > { %2740 = vmatmul.msk.bf16.vlgmr.msra.gmra.mxu0 %vm481_vm4, %v2167_v2  ;;  %v1017_v16 = vadd.f32 %v977_v45, %v863_v44  ;;  %v644_v26 = vadd.f32 %v643_v20, %v3355_v17  ;;  %v2153_v2 = vunpack.c.l.b16 %v2103_v57  ;;  %v1816_v45 = vor.u32 %v1815_v38, %v1811_v59 }
  0xd8   : > { %v1819_v20 = vshll.u32 %v3422_v41, 16  ;;  %v1807_v6 = vrot.slane %v1806_v10, 4  ;;  %v2109_v57 = vrot.slane %v3401_v33, 5  ;;  %v1422_v38 = vrot.slane %v3182_v54, 5 }
  0xd9   : > { %v825_v23 = vpop.f32.mrf.mxu2  ;;  %2624 = vmatmul.msk.bf16.gmra.mxu1 %vm481_vm4, %v1474_v58  ;;  %v3416_v24 = vadd.f32 %v1311_v52, %v1017_v16  ;;  %v1419_v58 = vsel %vm3079_vm8, %v1417_v31, %v1418_v11  ;;  %v2699_v16 = vld [vmem:[%s2932_s29 + $0x3c] sm:$0xf]  ;;  %v1817_v11 = vrot.slane %v1816_v45, 4  ;;  %v1839_v10 = vrot.slane %v1837_v29, 4 }
  0xda   : > { %v864_v17 = vadd.f32 %v825_v23, %v641_v25  ;;  %v2154_v25 = vunpack.c.l.b16 %v2106_v42  ;;  %v1462_v1 = vunpack.c.l.b16 %v1419_v58  ;;  %v1821_v46 = vrot.slane %v1819_v20, 5  ;;  %v2769_v20 = vld [vmem:[%s2932_s29 + $0x30] sm:$0xff] }
  0xdb   : > { %v1824_v4 = vshrl.u32 %v2699_v16, 16  ;;  %v1812_v42 = vsel %vm2969_vm5, %v1807_v6, %v1811_v59 }
  0xdc   : > { %v1313_v44 = vpop.f32.mrf.mxu0  ;;  %v2168_v51 = vpack.c.b16 %v2154_v25, %v2153_v2  ;;  %v2733_v2 = vrot.slane %v2725_v7, 9  ;;  %v2111_v25 = vrot.slane %v2109_v57, 4 }
  0xdd   : > { %v1826_v9 = vrot.slane %v1824_v4, 4 }
  0xde   : > { %v979_v47 = vpop.f32.mrf.mxu3  ;;  %2683 = vmatmul.msk.bf16.gmra.mxu2 %vm481_vm4, %v2768_v55  ;;  %v645_v52 = vpop.f32.mrf.mxu1  ;;  %v1475_v55 = vpack.c.b16 %v1462_v1, %v1461_v62  ;;  %v1424_v62 = vrot.slane %v1422_v38, 4  ;;  %v3457_v1 = vld [vmem:[%s2932_s29 + $0x44] sm:$0x1] }
  0xdf   : > { %v1018_v56 = vadd.f32 %v979_v47, %v864_v17  ;;  %v646_v37 = vadd.f32 %v645_v52, %v3379_v0  ;;  %v1827_v17 = vshll.u32 %v2699_v16, 16  ;;  %v2609_v47 = vld [vmem:[%s2932_s29 + $0x30] sm:$0xe]  ;;  %v2112_v52 = vrot.slane %v3422_v41, 5 }
  0xe0   : > { %v1949_v16 = vunpack.c.l.b16 %v1812_v42  ;;  %v2110_v41 = vsel %vm3079_vm8, %v2733_v2, %v2109_v57 }
  0xe1   : > { %v828_v3 = vpop.f32.mrf.mxu2  ;;  %v3436_v23 = vadd.f32 %v1313_v44, %v1018_v56  ;;  %v1829_v58 = vrot.slane %v1827_v17, 5 }
  0xe2   : > { %v865_v5 = vadd.f32 %v828_v3, %v644_v26  ;;  %v1833_v26 = vshll.u32 %v3433_v53, 16  ;;  %v2617_v3 = vrot.slane %v2609_v47, 9 }
  0xe3   : > { %2716 = vmatmul.msk.bf16.gmra.mxu3 %vm481_vm4, %v1962_v40  ;;  %v1822_v40 = vsel %vm2969_vm5, %v1817_v11, %v1821_v46  ;;  %v1830_v11 = vor.u32 %v1829_v58, %v1826_v9 }
  0xe4   : > { %v1316_v0 = vpop.f32.mrf.mxu0  ;;  %v1835_v54 = vrot.slane %v1833_v26, 5  ;;  %v1423_v4 = vsel %vm3079_vm8, %v2617_v3, %v1422_v38  ;;  %v2702_v38 = vld [vmem:[%s2932_s29 + $0x48] sm:$0xf] }
  0xe5   : > { %v1463_v42 = vunpack.c.l.b16 %v1423_v4 }
  0xe6   : > { %v982_v31 = vpop.f32.mrf.mxu3  ;;  %v648_v35 = vpop.f32.mrf.mxu1  ;;  %v1840_v46 = vor.u32 %v1839_v10, %v1835_v54  ;;  %v3479_v10 = vld [vmem:[%s2932_s29 + $0x4c] sm:$0xf] }
  0xe7   : > { %2741 = vmatmul.msk.bf16.gmra.mxu0 %vm481_vm4, %v2168_v51  ;;  %v1019_v44 = vadd.f32 %v982_v31, %v865_v5  ;;  %v649_v33 = vadd.f32 %v648_v35, %v3273_v14  ;;  %v1425_v14 = vrot.slane %v3193_v8, 5  ;;  %v1950_v5 = vunpack.c.l.b16 %v1822_v40 }
  0xe8   : > { %v2113_v51 = vsel %vm3079_vm8, %v2111_v25, %v2112_v52  ;;  %v1831_v31 = vrot.slane %v1830_v11, 4  ;;  %v1841_v40 = vrot.slane %v1840_v46, 4  ;;  %v2726_v25 = vld [vmem:[%s2932_s29 + $0x3c] sm:$0xe]  ;;  %v2116_v52 = vrot.slane %v3433_v53, 5 }
  0xe9   : > { %v830_v59 = vpop.f32.mrf.mxu2  ;;  %2625 = vmatmul.msk.bf16.gmra.mxu1 %vm481_vm4, %v1475_v55  ;;  %v3452_v56 = vadd.f32 %v1316_v0, %v1019_v44  ;;  %v1843_v0 = vshll.u32 %v3457_v1, 16  ;;  %v1426_v57 = vsel %vm3079_vm8, %v1424_v62, %v1425_v14  ;;  %v1963_v55 = vpack.c.b16 %v1950_v5, %v1949_v16 }
  0xea   : > { %v866_v45 = vadd.f32 %v830_v59, %v646_v37  ;;  %v2155_v37 = vunpack.c.l.b16 %v2110_v41  ;;  %v2156_v26 = vunpack.c.l.b16 %v2113_v51  ;;  %v1464_v44 = vunpack.c.l.b16 %v1426_v57  ;;  %v2610_v51 = vld [vmem:[%s2932_s29 + $0x3c] sm:$0xe] }
  0xeb   : > { %v1845_v2 = vrot.slane %v1843_v0, 5  ;;  %v2118_v62 = vrot.slane %v2116_v52, 4  ;;  %v2119_v16 = vrot.slane %v3457_v1, 5  ;;  %v1429_v5 = vrot.slane %v3201_v21, 5  ;;  %v2770_v57 = vld [vmem:[%s2932_s29 + $0x3c] sm:$0xff] }
  0xec   : > { %v1318_v6 = vpop.f32.mrf.mxu0  ;;  %v2169_v9 = vpack.c.b16 %v2156_v26, %v2155_v37  ;;  %v1476_v14 = vpack.c.b16 %v1464_v44, %v1463_v42  ;;  %v1851_v41 = vshll.u32 %v2702_v38, 16  ;;  %v1857_v11 = vshll.u32 %v3479_v10, 16  ;;  %v2704_v44 = vld [vmem:[%s2932_s29 + $0x50] sm:$0x1] }
  0xed   : > { %v1861_v46 = vshrl.u32 %v3479_v10, 16  ;;  %v1432_v0 = vrot.slane %v3216_v50, 5  ;;  %v2120_v50 = vsel %vm3079_vm8, %v2118_v62, %v2119_v16 }
  0xee   : > { %v984_v8 = vpop.f32.mrf.mxu3  ;;  %2684 = vmatmul.msk.bf16.gmra.mxu2 %vm481_vm4, %v2769_v20  ;;  %v650_v7 = vpop.f32.mrf.mxu1  ;;  %v1848_v20 = vshrl.u32 %v2702_v38, 16  ;;  %v1853_v26 = vrot.slane %v1851_v41, 5 }
  0xef   : > { %v1020_v17 = vadd.f32 %v984_v8, %v866_v45  ;;  %v651_v29 = vadd.f32 %v650_v7, %v3292_v39  ;;  %v1836_v39 = vsel %vm2969_vm5, %v1831_v31, %v1835_v54  ;;  %v2734_v45 = vrot.slane %v2726_v25, 9 }
  0xf0   : > { %v1951_v8 = vunpack.c.l.b16 %v1836_v39  ;;  %v1850_v7 = vrot.slane %v1848_v20, 4  ;;  %v1859_v31 = vrot.slane %v1857_v11, 5  ;;  %v2158_v25 = vunpack.c.l.b16 %v2120_v50 }
  0xf1   : > { %v833_v35 = vpop.f32.mrf.mxu2  ;;  %v3474_v58 = vadd.f32 %v1318_v6, %v1020_v17  ;;  %v2117_v1 = vsel %vm3079_vm8, %v2734_v45, %v2116_v52  ;;  %v2618_v17 = vrot.slane %v2610_v51, 9  ;;  %v2126_v50 = vrot.slane %v2704_v44, 5 }
  0xf2   : > { %v867_v47 = vadd.f32 %v833_v35, %v649_v33  ;;  %v1846_v33 = vsel %vm2969_vm5, %v1841_v40, %v1845_v2  ;;  %v1863_v35 = vrot.slane %v1861_v46, 4  ;;  %v2157_v2 = vunpack.c.l.b16 %v2117_v1  ;;  %v2705_v46 = vld [vmem:[%s2932_s29 + $0x54] sm:$0xf] }
  0xf3   : > { %2717 = vmatmul.msk.bf16.gmra.mxu3 %vm481_vm4, %v1963_v55  ;;  %v1952_v21 = vunpack.c.l.b16 %v1846_v33  ;;  %v1431_v55 = vrot.slane %v1429_v5, 4  ;;  %v1867_v33 = vshll.u32 %v2704_v44, 16 }
  0xf4   : > { %v1321_v59 = vpop.f32.mrf.mxu0  ;;  %v2170_v16 = vpack.c.b16 %v2158_v25, %v2157_v2 }
  0xf5   : > { %v1964_v40 = vpack.c.b16 %v1952_v21, %v1951_v8  ;;  %v1433_v38 = vsel %vm3079_vm8, %v1431_v55, %v1432_v0  ;;  %v1869_v41 = vrot.slane %v1867_v33, 5  ;;  %v3513_v8 = vld [vmem:[%s2932_s29 + $0x58] sm:$0xf]  ;;  %v1875_v55 = vshll.u32 %v2705_v46, 16 }
  0xf6   : > { %v987_v53 = vpop.f32.mrf.mxu3  ;;  %v653_v3 = vpop.f32.mrf.mxu1 }
  0xf7   : > { %2742 = vmatmul.msk.bf16.gmra.mxu0 %vm481_vm4, %v2169_v9  ;;  %v1021_v54 = vadd.f32 %v987_v53, %v867_v47  ;;  %v654_v6 = vadd.f32 %v653_v3, %v3320_v13  ;;  %v1854_v9 = vor.u32 %v1853_v26, %v1850_v7  ;;  %v1466_v53 = vunpack.c.l.b16 %v1433_v38 }
  0xf8   : > { %v1436_v7 = vrot.slane %v3228_v28, 5 }
  0xf9   : > { %v835_v37 = vpop.f32.mrf.mxu2  ;;  %2626 = vmatmul.msk.bf16.gmra.mxu1 %vm481_vm4, %v1476_v14  ;;  %v3494_v4 = vadd.f32 %v1321_v59, %v1021_v54  ;;  %v1864_v14 = vor.u32 %v1863_v35, %v1859_v31  ;;  %v1855_v62 = vrot.slane %v1854_v9, 4  ;;  %v2727_v54 = vld [vmem:[%s2932_s29 + $0x48] sm:$0xe]  ;;  %v1881_v35 = vshll.u32 %v3513_v8, 16 }
  0xfa   : > { %v868_v13 = vadd.f32 %v835_v37, %v651_v29  ;;  %v1430_v29 = vsel %vm3079_vm8, %v2618_v17, %v1429_v5  ;;  %v2735_v1 = vrot.slane %v2727_v54, 9  ;;  %v1872_v17 = vshrl.u32 %v2705_v46, 16 }
  0xfb   : > { %v1465_v20 = vunpack.c.l.b16 %v1430_v29  ;;  %v1865_v5 = vrot.slane %v1864_v14, 4  ;;  %v1438_v29 = vrot.slane %v1436_v7, 4  ;;  %v1883_v33 = vrot.slane %v1881_v35, 5 }
  0xfc   : > { %v1323_v42 = vpop.f32.mrf.mxu0  ;;  %v1874_v9 = vrot.slane %v1872_v17, 4  ;;  %v2130_v35 = vrot.slane %v3513_v8, 5 }
  0xfd   : > { %v1477_v0 = vpack.c.b16 %v1466_v53, %v1465_v20  ;;  %v3534_v20 = vld [vmem:[%s2932_s29 + $0x5c] sm:$0x1] }
  0xfe   : > { %v989_v47 = vpop.f32.mrf.mxu3  ;;  %2685 = vmatmul.msk.bf16.gmra.mxu2 %vm481_vm4, %v2770_v57  ;;  %v655_v52 = vpop.f32.mrf.mxu1  ;;  %v1870_v57 = vsel %vm2969_vm5, %v1865_v5, %v1869_v41 }
  0xff   : > { %v1022_v59 = vadd.f32 %v989_v47, %v868_v13  ;;  %v656_v39 = vadd.f32 %v655_v52, %v3341_v43  ;;  %v2123_v43 = vrot.slane %v3479_v10, 5  ;;  %v2611_v10 = vld [vmem:[%s2932_s29 + $0x48] sm:$0xe]  ;;  %v1954_v38 = vunpack.c.l.b16 %v1870_v57  ;;  %v2708_v57 = vld [vmem:[%s2932_s29 + $0x60] sm:$0xf] }
 0x100   : > { %v2771_v47 = vld [vmem:[%s2932_s29 + $0x48] sm:$0xff]  ;;  %v2619_v52 = vrot.slane %v2611_v10, 9  ;;  %v3545_v10 = vld [vmem:[%s2932_s29 + $0x64] sm:$0xf] }
 0x101   : > { %v838_v45 = vpop.f32.mrf.mxu2  ;;  %v3508_v51 = vadd.f32 %v1323_v42, %v1022_v59  ;;  %v2125_v26 = vrot.slane %v2123_v43, 4  ;;  %v1885_v42 = vshrl.u32 %v3513_v8, 16  ;;  %v2124_v44 = vsel %vm3079_vm8, %v2735_v1, %v2123_v43 }
 0x102   : > { %v869_v3 = vadd.f32 %v838_v45, %v654_v6  ;;  %v1860_v6 = vsel %vm2969_vm5, %v1855_v62, %v1859_v31  ;;  %v1439_v31 = vrot.slane %v3243_v27, 5  ;;  %v1877_v59 = vrot.slane %v1875_v55, 5 }
 0x103   : > { %2718 = vmatmul.msk.bf16.gmra.mxu3 %vm481_vm4, %v1964_v40  ;;  %v1953_v25 = vunpack.c.l.b16 %v1860_v6  ;;  %v2127_v27 = vsel %vm3079_vm8, %v2125_v26, %v2126_v50  ;;  %v1887_v45 = vrot.slane %v1885_v42, 4  ;;  %v1437_v62 = vsel %vm3079_vm8, %v2619_v52, %v1436_v7 }
 0x104   : > { %v1326_v11 = vpop.f32.mrf.mxu0  ;;  %v2160_v54 = vunpack.c.l.b16 %v2127_v27  ;;  %v1467_v6 = vunpack.c.l.b16 %v1437_v62  ;;  %v1443_v52 = vrot.slane %v3256_v19, 5  ;;  %v2132_v19 = vrot.slane %v2130_v35, 4 }
 0x105   : > { %v1965_v41 = vpack.c.b16 %v1954_v38, %v1953_v25  ;;  %v1888_v46 = vor.u32 %v1887_v45, %v1883_v33  ;;  %v1446_v38 = vrot.slane %v3270_v12, 5  ;;  %v2133_v45 = vrot.slane %v3534_v20, 5 }
 0x106   : > { %v992_v37 = vpop.f32.mrf.mxu3  ;;  %v658_v21 = vpop.f32.mrf.mxu1 }
 0x107   : > { %2743 = vmatmul.msk.bf16.gmra.mxu0 %vm481_vm4, %v2170_v16  ;;  %v1023_v13 = vadd.f32 %v992_v37, %v869_v3  ;;  %v1440_v16 = vsel %vm3079_vm8, %v1438_v29, %v1439_v31  ;;  %v659_v43 = vadd.f32 %v658_v21, %v3297_v48  ;;  %v1889_v50 = vrot.slane %v1888_v46, 4  ;;  %v2728_v21 = vld [vmem:[%s2932_s29 + $0x54] sm:$0xe] }
 0x108   : > { %v1468_v1 = vunpack.c.l.b16 %v1440_v16  ;;  %v1896_v31 = vshrl.u32 %v2708_v57, 16  ;;  %v1909_v29 = vshrl.u32 %v3545_v10, 16 }
 0x109   : > { %v840_v40 = vpop.f32.mrf.mxu2  ;;  %2627 = vmatmul.msk.bf16.gmra.mxu1 %vm481_vm4, %v1477_v0  ;;  %v3526_v28 = vadd.f32 %v1326_v11, %v1023_v13  ;;  %v1878_v11 = vor.u32 %v1877_v59, %v1874_v9  ;;  %v1891_v0 = vshll.u32 %v3534_v20, 16  ;;  %v2736_v9 = vrot.slane %v2728_v21, 9  ;;  %v2612_v59 = vld [vmem:[%s2932_s29 + $0x54] sm:$0xe] }
 0x10a   : > { %v870_v2 = vadd.f32 %v840_v40, %v656_v39  ;;  %v2159_v39 = vunpack.c.l.b16 %v2124_v44  ;;  %v1478_v42 = vpack.c.b16 %v1468_v1, %v1467_v6  ;;  %v1899_v40 = vshll.u32 %v2708_v57, 16 }
 0x10b   : > { %v1879_v17 = vrot.slane %v1878_v11, 4  ;;  %v1893_v48 = vrot.slane %v1891_v0, 5  ;;  %v1898_v12 = vrot.slane %v1896_v31, 4  ;;  %v2131_v20 = vsel %vm3079_vm8, %v2736_v9, %v2130_v35 }
 0x10c   : > { %v1328_v14 = vpop.f32.mrf.mxu0  ;;  %v2171_v7 = vpack.c.b16 %v2160_v54, %v2159_v39  ;;  %v1901_v39 = vrot.slane %v1899_v40, 5  ;;  %v2134_v0 = vsel %vm3079_vm8, %v2132_v19, %v2133_v45 }
 0x10d   : > { %v1884_v8 = vsel %vm2969_vm5, %v1879_v17, %v1883_v33  ;;  %v1894_v27 = vsel %vm2969_vm5, %v1889_v50, %v1893_v48  ;;  %v2161_v48 = vunpack.c.l.b16 %v2131_v20  ;;  %v2162_v21 = vunpack.c.l.b16 %v2134_v0 }
 0x10e   : > { %v994_v53 = vpop.f32.mrf.mxu3  ;;  %2686 = vmatmul.msk.bf16.gmra.mxu2 %vm481_vm4, %v2771_v47  ;;  %v660_v3 = vpop.f32.mrf.mxu1  ;;  %v1955_v54 = vunpack.c.l.b16 %v1884_v8  ;;  %v1956_v11 = vunpack.c.l.b16 %v1894_v27  ;;  %v2137_v8 = vrot.slane %v3545_v10, 5 }
 0x10f   : > { %v1024_v5 = vadd.f32 %v994_v53, %v870_v2  ;;  %v1905_v2 = vshll.u32 %v3545_v10, 16 }
 0x110   : > { %v1966_v50 = vpack.c.b16 %v1956_v11, %v1955_v54 }
 0x111   : > { %v843_v37 = vpop.f32.mrf.mxu2  ;;  %v3548_v55 = vadd.f32 %v1328_v14, %v1024_v5  ;;  %v661_v14 = vadd.f32 %v660_v3, %v3324_v22  ;;  %v3565_v62 = vrot.slane %v1905_v2, 5  ;;  %v2772_v5 = vld [vmem:[%s2932_s29 + $0x54] sm:$0xff]  ;;  %v1445_v22 = vrot.slane %v1443_v52, 4 }
 0x112   : > { %v871_v13 = vadd.f32 %v843_v37, %v659_v43  ;;  %v1911_v3 = vrot.slane %v1909_v29, 4  ;;  %v3571_v43 = vld [vmem:[%s2932_s29 + $0x68] sm:$0x1]  ;;  %v1902_v37 = vor.u32 %v1901_v39, %v1898_v12  ;;  %v1450_v39 = vrot.slane %v3285_v30, 5 }
 0x113   : > { %2719 = vmatmul.msk.bf16.gmra.mxu3 %vm481_vm4, %v1965_v41  ;;  %v2620_v41 = vrot.slane %v2612_v59, 9  ;;  %v1447_v57 = vsel %vm3079_vm8, %v1445_v22, %v1446_v38  ;;  %v1915_v17 = vshll.u32 %v3571_v43, 16  ;;  %v2172_v38 = vpack.c.b16 %v2162_v21, %v2161_v48  ;;  %v2713_v48 = vld [vmem:[%s2932_s29 + $0x74] sm:$0x1] }
 0x114   : > { %v1331_v26 = vpop.f32.mrf.mxu0  ;;  %v1470_v40 = vunpack.c.l.b16 %v1447_v57  ;;  %v2140_v54 = vrot.slane %v3571_v43, 5  ;;  %v1452_v57 = vrot.slane %v1450_v39, 4 }
 0x115   : > { %v1917_v29 = vrot.slane %v1915_v17, 5 }
 0x116   : > { %v997_v47 = vpop.f32.mrf.mxu3  ;;  %v663_v25 = vpop.f32.mrf.mxu1 }
 0x117   : > { %2744 = vmatmul.msk.bf16.gmra.mxu0 %vm481_vm4, %v2171_v7  ;;  %v1025_v44 = vadd.f32 %v997_v47, %v871_v13  ;;  %v1444_v13 = vsel %vm3079_vm8, %v2620_v41, %v1443_v52  ;;  %v1912_v7 = vor.u32 %v1911_v3, %v3565_v62  ;;  %v664_v35 = vadd.f32 %v663_v25, %v3348_v63  ;;  %v3592_v25 = vld [vmem:[%s2932_s29 + $0x70] sm:$0xf] }
 0x118   : > { %v1469_v31 = vunpack.c.l.b16 %v1444_v13  ;;  %v1903_v47 = vrot.slane %v1902_v37, 4  ;;  %v1933_v11 = vshrl.u32 %v3592_v25, 16  ;;  %v2773_v37 = vld [vmem:[%s2932_s29 + $0x60] sm:$0xff] }
 0x119   : > { %v845_v53 = vpop.f32.mrf.mxu2  ;;  %2628 = vmatmul.msk.bf16.gmra.mxu1 %vm481_vm4, %v1478_v42  ;;  %v3567_v16 = vadd.f32 %v1331_v26, %v1025_v44  ;;  %v1913_v52 = vrot.slane %v1912_v7, 4  ;;  %v2729_v44 = vld [vmem:[%s2932_s29 + $0x60] sm:$0xe] }
 0x11a   : > { %v872_v33 = vadd.f32 %v845_v53, %v661_v14  ;;  %v2711_v14 = vld [vmem:[%s2932_s29 + $0x6c] sm:$0xf]  ;;  %v1479_v63 = vpack.c.b16 %v1470_v40, %v1469_v31  ;;  %v1908_v45 = vsel %vm2969_vm5, %v1903_v47, %v3565_v62  ;;  %v2737_v12 = vrot.slane %v2729_v44, 9 }
 0x11b   : > { %v1918_v53 = vsel %vm2969_vm5, %v1913_v52, %v1917_v29  ;;  %v1920_v41 = vshrl.u32 %v2711_v14, 16  ;;  %v1923_v22 = vshll.u32 %v2711_v14, 16  ;;  %v1929_v62 = vshll.u32 %v3592_v25, 16 }
 0x11c   : > { %v1333_v46 = vpop.f32.mrf.mxu0  ;;  %v2138_v43 = vsel %vm3079_vm8, %v2737_v12, %v2137_v8 }
 0x11d   : > { %v1925_v7 = vrot.slane %v1923_v22, 5 }
 0x11e   : > { %v999_v6 = vpop.f32.mrf.mxu3  ;;  %2687 = vmatmul.msk.bf16.gmra.mxu2 %vm481_vm4, %v2772_v5  ;;  %v665_v1 = vpop.f32.mrf.mxu1  ;;  %v2613_v5 = vld [vmem:[%s2932_s29 + $0x60] sm:$0xe] }
 0x11f   : > { %v1026_v26 = vadd.f32 %v999_v6, %v872_v33  ;;  %v2139_v33 = vrot.slane %v2137_v8, 4  ;;  %v666_v3 = vadd.f32 %v665_v1, %v3371_v18  ;;  %v1957_v6 = vunpack.c.l.b16 %v1908_v45 }
 0x120   : > { %v2621_v13 = vrot.slane %v2613_v5, 9  ;;  %v1958_v18 = vunpack.c.l.b16 %v1918_v53  ;;  %v1922_v1 = vrot.slane %v1920_v41, 4  ;;  %v1939_v8 = vshll.u32 %v2713_v48, 16  ;;  %v2730_v5 = vld [vmem:[%s2932_s29 + $0x6c] sm:$0xe] }
 0x121   : > { %v848_v42 = vpop.f32.mrf.mxu2  ;;  %v3588_v9 = vadd.f32 %v1333_v46, %v1026_v26  ;;  %v1453_v46 = vrot.slane %v3305_v60, 5  ;;  %v2141_v60 = vsel %vm3079_vm8, %v2139_v33, %v2140_v54  ;;  %v1931_v26 = vrot.slane %v1929_v62, 5 }
 0x122   : > { %v873_v2 = vadd.f32 %v848_v42, %v664_v35  ;;  %v2163_v35 = vunpack.c.l.b16 %v2138_v43  ;;  %v1451_v31 = vsel %vm3079_vm8, %v2621_v13, %v1450_v39  ;;  %v1967_v47 = vpack.c.b16 %v1958_v18, %v1957_v6  ;;  %v2774_v13 = vld [vmem:[%s2932_s29 + $0x6c] sm:$0xff] }
 0x123   : > { %2720 = vmatmul.msk.bf16.gmra.mxu3 %vm481_vm4, %v1966_v50  ;;  %v1935_v50 = vrot.slane %v1933_v11, 4  ;;  %v1454_v40 = vsel %vm3079_vm8, %v1452_v57, %v1453_v46  ;;  %v2164_v52 = vunpack.c.l.b16 %v2141_v60  ;;  %v1926_v29 = vor.u32 %v1925_v7, %v1922_v1 }
 0x124   : > { %v1336_v59 = vpop.f32.mrf.mxu0  ;;  %v1471_v14 = vunpack.c.l.b16 %v1451_v31  ;;  %v1941_v33 = vrot.slane %v1939_v8, 5  ;;  %v2144_v41 = vrot.slane %v3592_v25, 5  ;;  %v2738_v62 = vrot.slane %v2730_v5, 9 }
 0x125   : > { %v1936_v44 = vor.u32 %v1935_v50, %v1931_v26  ;;  %v2173_v53 = vpack.c.b16 %v2164_v52, %v2163_v35  ;;  %v1927_v12 = vrot.slane %v1926_v29, 4 }
 0x126   : > { %v1002_v27 = vpop.f32.mrf.mxu3  ;;  %v668_v19 = vpop.f32.mrf.mxu1  ;;  %v2145_v1 = vsel %vm3079_vm8, %v2738_v62, %v2144_v41 }
 0x127   : > { %2745 = vmatmul.msk.bf16.gmra.mxu0 %vm481_vm4, %v2172_v38  ;;  %v1027_v10 = vadd.f32 %v1002_v27, %v873_v2  ;;  %v669_v38 = vadd.f32 %v668_v19, %v3307_v61  ;;  %v1932_v54 = vsel %vm2969_vm5, %v1927_v12, %v1931_v26  ;;  %v2165_v26 = vunpack.c.l.b16 %v2145_v1 }
 0x128   : > { %v1959_v57 = vunpack.c.l.b16 %v1932_v54 }
 0x129   : > { %v850_v20 = vpop.f32.mrf.mxu2  ;;  %2629 = vmatmul.msk.bf16.gmra.mxu1 %vm481_vm4, %v1479_v63  ;;  %v3608_v30 = vadd.f32 %v1336_v59, %v1027_v10  ;;  %v1472_v63 = vunpack.c.l.b16 %v1454_v40  ;;  %v1937_v10 = vrot.slane %v1936_v44, 4 }
 0x12a   : > { %v874_v0 = vadd.f32 %v850_v20, %v666_v3  ;;  %v2146_v20 = vrot.slane %v2144_v41, 4 }
 0x12b   : > { %v1480_v61 = vpack.c.b16 %v1472_v63, %v1471_v14  ;;  %v1942_v46 = vsel %vm2969_vm5, %v1937_v10, %v1941_v33 }
 0x12c   : > { %v1338_v17 = vpop.f32.mrf.mxu0  ;;  %v1960_v18 = vunpack.c.l.b16 %v1942_v46 }
 0x12e   : > { %v1004_v21 = vpop.f32.mrf.mxu3  ;;  %2688 = vmatmul.msk.bf16.gmra.mxu2 %vm481_vm4, %v2773_v37  ;;  %v670_v42 = vpop.f32.mrf.mxu1  ;;  %v1968_v60 = vpack.c.b16 %v1960_v18, %v1959_v57 }
 0x12f   : > { %v1028_v2 = vadd.f32 %v1004_v21, %v874_v0  ;;  %v671_v11 = vadd.f32 %v670_v42, %v3335_v49  ;;  %v2147_v0 = vrot.slane %v2713_v48, 5 }
 0x131   : > { %v853_v59 = vpop.f32.mrf.mxu2  ;;  %v3622_v27 = vadd.f32 %v1338_v17, %v1028_v2  ;;  %v2148_v49 = vsel %vm3079_vm8, %v2146_v20, %v2147_v0 }
 0x132   : > { %v875_v45 = vadd.f32 %v853_v59, %v669_v38  ;;  %v2166_v50 = vunpack.c.l.b16 %v2148_v49 }
 0x133   : > { %2721 = vmatmul.msk.bf16.gmra.mxu3 %vm481_vm4, %v1967_v47 }
 0x134   : > { %v1341_v39 = vpop.f32.mrf.mxu0  ;;  %v2174_v31 = vpack.c.b16 %v2166_v50, %v2165_v26 }
 0x136   : > { %v1007_v19 = vpop.f32.mrf.mxu3  ;;  %v673_v22 = vpop.f32.mrf.mxu1 }
 0x137   : > { %2746 = vmatmul.msk.bf16.gmra.mxu0 %vm481_vm4, %v2173_v53  ;;  %v1029_v3 = vadd.f32 %v1007_v19, %v875_v45  ;;  %v674_v48 = vadd.f32 %v673_v22, %v3361_v34 }
 0x139   : > { %v855_v37 = vpop.f32.mrf.mxu2  ;;  %2630 = vmatmul.msk.bf16.gmra.mxu1 %vm481_vm4, %v1480_v61  ;;  %v3634_v25 = vadd.f32 %v1341_v39, %v1029_v3  ;;  %v3658_v3 = vld [vmem:[%s3708_s2] ss:$0 sm:$0xff] }
 0x13a   : > { %v876_v6 = vadd.f32 %v855_v37, %v671_v11 }
 0x13c   : > { %v1343_v43 = vpop.f32.mrf.mxu0 }
 0x13e   : > { %v1009_v36 = vpop.f32.mrf.mxu3  ;;  %2689 = vmatmul.msk.bf16.gmra.mxu2 %vm481_vm4, %v2774_v13  ;;  %v675_v7 = vpop.f32.mrf.mxu1 }
 0x13f   : > { %v1030_v17 = vadd.f32 %v1009_v36, %v876_v6  ;;  %v676_v29 = vadd.f32 %v675_v7, %v3386_v15 }
 0x141   : > { %v858_v21 = vpop.f32.mrf.mxu2  ;;  %v3643_v35 = vadd.f32 %v1343_v43, %v1030_v17 }
 0x142   : > { %v877_v42 = vadd.f32 %v858_v21, %v674_v48 }
 0x143   : > { %2722 = vmatmul.msk.bf16.gmra.mxu3 %vm481_vm4, %v1968_v60 }
 0x144   : > { %v1346_v40 = vpop.f32.mrf.mxu0 }
 0x146   : > { %v1012_v32 = vpop.f32.mrf.mxu3  ;;  %v1517_v2 = vpop.f32.mrf.mxu1 }
 0x147   : > { %2747 = vmatmul.msk.bf16.gmra.mxu0 %vm481_vm4, %v2174_v31  ;;  %v1031_v47 = vadd.f32 %v1012_v32, %v877_v42  ;;  %v1557_v52 = vadd.f32 %v1517_v2, %v3416_v24 }
 0x149   : > { %v860_v38 = vpop.f32.mrf.mxu2  ;;  %v3649_v44 = vadd.f32 %v1346_v40, %v1031_v47 }
 0x14a   : > { %v878_v34 = vadd.f32 %v860_v38, %v676_v29 }
 0x14c   : > { %v1348_v8 = vpop.f32.mrf.mxu0 }
 0x14e   : > { %v1014_v59 = vpop.f32.mrf.mxu3  ;;  %v1519_v14 = vpop.f32.mrf.mxu1 }
 0x14f   : > { %v1032_v63 = vadd.f32 %v1014_v59, %v878_v34  ;;  %v1558_v45 = vadd.f32 %v1519_v14, %v3436_v23 }
 0x151   : > { %v1671_v53 = vpop.f32.mrf.mxu2  ;;  %v3652_v12 = vadd.f32 %v1348_v8, %v1032_v63 }
 0x152   : > { %v1711_v39 = vadd.f32 %v1671_v53, %v1557_v52 }
 0x154   : > { %v2211_v10 = vpop.f32.mrf.mxu0 }
 0x156   : > { %v2005_v33 = vpop.f32.mrf.mxu3  ;;  %v1522_v5 = vpop.f32.mrf.mxu1 }
 0x157   : > { %v2045_v24 = vadd.f32 %v2005_v33, %v1711_v39  ;;  %v1559_v15 = vadd.f32 %v1522_v5, %v3452_v56 }
 0x159   : > { %v2251_v41 = vadd.f32 %v2211_v10, %v2045_v24  ;;  %v1673_v61 = vpop.f32.mrf.mxu2 }
 0x15a   : > { %v1712_v19 = vadd.f32 %v1673_v61, %v1558_v45 }
 0x15b   : > { %v2271_v46 = vadd.f32 %v3658_v3, %v2251_v41 }
 0x15c   : > { %v2213_v22 = vpop.f32.mrf.mxu0 }
 0x15d   : > { %v2287_v13 = vmax.f32 %v2271_v46, 0.0 }
 0x15e   : > { %v2007_v23 = vpop.f32.mrf.mxu3  ;;  %v1524_v54 = vpop.f32.mrf.mxu1 }
 0x15f   : > { %v2046_v62 = vadd.f32 %v2007_v23, %v1712_v19  ;;  %v1560_v11 = vadd.f32 %v1524_v54, %v3474_v58 }
 0x161   : > { %v2252_v20 = vadd.f32 %v2213_v22, %v2046_v62  ;;  %v1676_v0 = vpop.f32.mrf.mxu2 }
 0x162   : > { %v1713_v37 = vadd.f32 %v1676_v0, %v1559_v15 }
 0x163   : > { %v2272_v56 = vadd.f32 %v3658_v3, %v2252_v20 }
 0x164   : > { %v2216_v6 = vpop.f32.mrf.mxu0 }
 0x165   : > { %v2288_v57 = vmax.f32 %v2272_v56, 0.0 }
 0x166   : > { %v2010_v18 = vpop.f32.mrf.mxu3  ;;  %v1527_v43 = vpop.f32.mrf.mxu1 }
 0x167   : > { %v2304_v1 = vadd.f32 %v2288_v57, %v2287_v13  ;;  %v2047_v49 = vadd.f32 %v2010_v18, %v1713_v37  ;;  %v1561_v36 = vadd.f32 %v1527_v43, %v3494_v4 }
 0x169   : > { %v2253_v7 = vadd.f32 %v2216_v6, %v2047_v49  ;;  %v1678_v17 = vpop.f32.mrf.mxu2 }
 0x16a   : > { %v1714_v60 = vadd.f32 %v1678_v17, %v1560_v11 }
 0x16b   : > { %v2273_v58 = vadd.f32 %v3658_v3, %v2253_v7 }
 0x16c   : > { %v2218_v26 = vpop.f32.mrf.mxu0 }
 0x16d   : > { %v2289_v50 = vmax.f32 %v2273_v58, 0.0 }
 0x16e   : > { %v2012_v48 = vpop.f32.mrf.mxu3  ;;  %v1529_v21 = vpop.f32.mrf.mxu1 }
 0x16f   : > { %v2305_v42 = vadd.f32 %v2304_v1, %v2289_v50  ;;  %v2048_v31 = vadd.f32 %v2012_v48, %v1714_v60  ;;  %v1562_v14 = vadd.f32 %v1529_v21, %v3508_v51 }
 0x171   : > { %v2254_v40 = vadd.f32 %v2218_v26, %v2048_v31  ;;  %v1681_v32 = vpop.f32.mrf.mxu2 }
 0x172   : > { %v1715_v2 = vadd.f32 %v1681_v32, %v1561_v36 }
 0x173   : > { %v2274_v47 = vadd.f32 %v3658_v3, %v2254_v40 }
 0x174   : > { %v2221_v52 = vpop.f32.mrf.mxu0 }
 0x175   : > { %v2290_v29 = vmax.f32 %v2274_v47, 0.0 }
 0x176   : > { %v2015_v38 = vpop.f32.mrf.mxu3  ;;  %v1532_v4 = vpop.f32.mrf.mxu1 }
 0x177   : > { %v2306_v34 = vadd.f32 %v2305_v42, %v2290_v29  ;;  %v2049_v8 = vadd.f32 %v2015_v38, %v1715_v2  ;;  %v1563_v61 = vadd.f32 %v1532_v4, %v3526_v28 }
 0x179   : > { %v2255_v59 = vadd.f32 %v2221_v52, %v2049_v8  ;;  %v1683_v63 = vpop.f32.mrf.mxu2 }
 0x17a   : > { %v1716_v53 = vadd.f32 %v1683_v63, %v1562_v14 }
 0x17b   : > { %v2275_v45 = vadd.f32 %v3658_v3, %v2255_v59 }
 0x17c   : > { %v2223_v39 = vpop.f32.mrf.mxu0 }
 0x17d   : > { %v2291_v10 = vmax.f32 %v2275_v45, 0.0 }
 0x17e   : > { %v2017_v33 = vpop.f32.mrf.mxu3  ;;  %v1534_v5 = vpop.f32.mrf.mxu1 }
 0x17f   : > { %v2307_v24 = vadd.f32 %v2306_v34, %v2291_v10  ;;  %v2050_v15 = vadd.f32 %v2017_v33, %v1716_v53  ;;  %v1564_v37 = vadd.f32 %v1534_v5, %v3548_v55 }
 0x181   : > { %v2256_v41 = vadd.f32 %v2223_v39, %v2050_v15  ;;  %v1686_v19 = vpop.f32.mrf.mxu2 }
 0x182   : > { %v1717_v23 = vadd.f32 %v1686_v19, %v1563_v61 }
 0x183   : > { %v2276_v22 = vadd.f32 %v3658_v3, %v2256_v41 }
 0x184   : > { %v2226_v54 = vpop.f32.mrf.mxu0 }
 0x185   : > { %v2292_v62 = vmax.f32 %v2276_v22, 0.0 }
 0x186   : > { %v2020_v51 = vpop.f32.mrf.mxu3  ;;  %v1537_v11 = vpop.f32.mrf.mxu1 }
 0x187   : > { %v2308_v46 = vadd.f32 %v2307_v24, %v2292_v62  ;;  %v2051_v20 = vadd.f32 %v2020_v51, %v1717_v23  ;;  %v1565_v7 = vadd.f32 %v1537_v11, %v3567_v16 }
 0x189   : > { %v2257_v0 = vadd.f32 %v2226_v54, %v2051_v20  ;;  %v1688_v56 = vpop.f32.mrf.mxu2 }
 0x18a   : > { %v1718_v13 = vadd.f32 %v1688_v56, %v1564_v37 }
 0x18b   : > { %v2277_v6 = vadd.f32 %v3658_v3, %v2257_v0 }
 0x18c   : > { %v2228_v57 = vpop.f32.mrf.mxu0 }
 0x18d   : > { %v2293_v18 = vmax.f32 %v2277_v6, 0.0 }
 0x18e   : > { %v2022_v28 = vpop.f32.mrf.mxu3  ;;  %v1539_v43 = vpop.f32.mrf.mxu1 }
 0x18f   : > { %v2309_v1 = vadd.f32 %v2308_v46, %v2293_v18  ;;  %v2052_v49 = vadd.f32 %v2022_v28, %v1718_v13  ;;  %v1566_v40 = vadd.f32 %v1539_v43, %v3588_v9 }
 0x191   : > { %v2258_v36 = vadd.f32 %v2228_v57, %v2052_v49  ;;  %v1691_v17 = vpop.f32.mrf.mxu2 }
 0x192   : > { %v1719_v58 = vadd.f32 %v1691_v17, %v1565_v7 }
 0x193   : > { %v2278_v60 = vadd.f32 %v3658_v3, %v2258_v36 }
 0x194   : > { %v2231_v26 = vpop.f32.mrf.mxu0 }
 0x195   : > { %v2294_v50 = vmax.f32 %v2278_v60, 0.0 }
 0x196   : > { %v2025_v55 = vpop.f32.mrf.mxu3  ;;  %v1542_v48 = vpop.f32.mrf.mxu1 }
 0x197   : > { %v2310_v21 = vadd.f32 %v2309_v1, %v2294_v50  ;;  %v2053_v42 = vadd.f32 %v2025_v55, %v1719_v58  ;;  %v1567_v59 = vadd.f32 %v1542_v48, %v3608_v30 }
 0x199   : > { %v2259_v31 = vadd.f32 %v2231_v26, %v2053_v42  ;;  %v1693_v32 = vpop.f32.mrf.mxu2 }
 0x19a   : > { %v1720_v47 = vadd.f32 %v1693_v32, %v1566_v40 }
 0x19b   : > { %v2279_v2 = vadd.f32 %v3658_v3, %v2259_v31 }
 0x19c   : > { %v2233_v52 = vpop.f32.mrf.mxu0 }
 0x19d   : > { %v2295_v29 = vmax.f32 %v2279_v2, 0.0 }
 0x19e   : > { %v2027_v16 = vpop.f32.mrf.mxu3  ;;  %v1544_v38 = vpop.f32.mrf.mxu1 }
 0x19f   : > { %v2311_v4 = vadd.f32 %v2310_v21, %v2295_v29  ;;  %v2054_v34 = vadd.f32 %v2027_v16, %v1720_v47  ;;  %v1568_v15 = vadd.f32 %v1544_v38, %v3622_v27 }
 0x1a1   : > { %v2260_v8 = vadd.f32 %v2233_v52, %v2054_v34  ;;  %v1696_v14 = vpop.f32.mrf.mxu2 }
 0x1a2   : > { %v1721_v45 = vadd.f32 %v1696_v14, %v1567_v59 }
 0x1a3   : > { %v2280_v63 = vadd.f32 %v3658_v3, %v2260_v8 }
 0x1a4   : > { %v2236_v53 = vpop.f32.mrf.mxu0 }
 0x1a5   : > { %v2296_v39 = vmax.f32 %v2280_v63, 0.0 }
 0x1a6   : > { %v2030_v9 = vpop.f32.mrf.mxu3  ;;  %v1547_v5 = vpop.f32.mrf.mxu1 }
 0x1a7   : > { %v2312_v10 = vadd.f32 %v2311_v4, %v2296_v39  ;;  %v2055_v33 = vadd.f32 %v2030_v9, %v1721_v45  ;;  %v1569_v11 = vadd.f32 %v1547_v5, %v3634_v25  ;;  %v2303_v5 = vld [vmem:[%s2919_s22] sm:$0x1] }
 0x1a9   : > { %v2261_v24 = vadd.f32 %v2236_v53, %v2055_v33  ;;  %v1698_v41 = vpop.f32.mrf.mxu2 }
 0x1aa   : > { %v1722_v19 = vadd.f32 %v1698_v41, %v1568_v15 }
 0x1ab   : > { %v2281_v61 = vadd.f32 %v3658_v3, %v2261_v24 }
 0x1ac   : > { %v2238_v22 = vpop.f32.mrf.mxu0 }
 0x1ad   : > { %v2297_v23 = vmax.f32 %v2281_v61, 0.0 }
 0x1ae   : > { %v2032_v30 = vpop.f32.mrf.mxu3  ;;  %v1549_v20 = vpop.f32.mrf.mxu1 }
 0x1af   : > { %v2313_v54 = vadd.f32 %v2312_v10, %v2297_v23  ;;  %v2056_v62 = vadd.f32 %v2032_v30, %v1722_v19  ;;  %v1570_v28 = vadd.f32 %v1549_v20, %v3643_v35 }
 0x1b1   : > { %v2262_v51 = vadd.f32 %v2238_v22, %v2056_v62  ;;  %v1701_v46 = vpop.f32.mrf.mxu2 }
 0x1b2   : > { %v1723_v37 = vadd.f32 %v1701_v46, %v1569_v11 }
 0x1b3   : > { %v2282_v0 = vadd.f32 %v3658_v3, %v2262_v51 }
 0x1b4   : > { %v2241_v56 = vpop.f32.mrf.mxu0 }
 0x1b5   : > { %v2298_v6 = vmax.f32 %v2282_v0, 0.0 }
 0x1b6   : > { %v2035_v27 = vpop.f32.mrf.mxu3  ;;  %v1552_v36 = vpop.f32.mrf.mxu1 }
 0x1b7   : > { %v2314_v13 = vadd.f32 %v2313_v54, %v2298_v6  ;;  %v2057_v57 = vadd.f32 %v2035_v27, %v1723_v37  ;;  %v1571_v50 = vadd.f32 %v1552_v36, %v3649_v44 }
 0x1b9   : > { %v2263_v18 = vadd.f32 %v2241_v56, %v2057_v57  ;;  %v1703_v43 = vpop.f32.mrf.mxu2 }
 0x1ba   : > { %v1724_v49 = vadd.f32 %v1703_v43, %v1570_v28 }
 0x1bb   : > { %v2283_v1 = vadd.f32 %v3658_v3, %v2263_v18 }
 0x1bc   : > { %v2243_v7 = vpop.f32.mrf.mxu0 }
 0x1bd   : > { %v2299_v25 = vmax.f32 %v2283_v1, 0.0 }
 0x1be   : > { %v2037_v17 = vpop.f32.mrf.mxu3  ;;  %v1554_v31 = vpop.f32.mrf.mxu1 }
 0x1bf   : > { %v2315_v60 = vadd.f32 %v2314_v13, %v2299_v25  ;;  %v2058_v58 = vadd.f32 %v2037_v17, %v1724_v49  ;;  %v1572_v52 = vadd.f32 %v1554_v31, %v3652_v12 }
 0x1c1   : > { %v2264_v26 = vadd.f32 %v2243_v7, %v2058_v58  ;;  %v1706_v55 = vpop.f32.mrf.mxu2 }
 0x1c2   : > { %v1725_v21 = vadd.f32 %v1706_v55, %v1571_v50 }
 0x1c3   : > { %v2284_v48 = vadd.f32 %v3658_v3, %v2264_v26 }
 0x1c4   : > { %v2246_v35 = vpop.f32.mrf.mxu0 }
 0x1c5   : > { %v2300_v42 = vmax.f32 %v2284_v48, 0.0 }
 0x1c6   : > { %v2040_v40 = vpop.f32.mrf.mxu3 }
 0x1c7   : > { %v2316_v32 = vadd.f32 %v2315_v60, %v2300_v42  ;;  %v2059_v2 = vadd.f32 %v2040_v40, %v1725_v21 }
 0x1c9   : > { %v2265_v47 = vadd.f32 %v2246_v35, %v2059_v2  ;;  %v1708_v29 = vpop.f32.mrf.mxu2 }
 0x1ca   : > { %v1726_v38 = vadd.f32 %v1708_v29, %v1572_v52 }
 0x1cb   : > { %v2285_v16 = vadd.f32 %v3658_v3, %v2265_v47 }
 0x1cc   : > { %v2248_v59 = vpop.f32.mrf.mxu0 }
 0x1cd   : > { %v2301_v4 = vmax.f32 %v2285_v16, 0.0 }
 0x1ce   : > { %v2042_v44 = vpop.f32.mrf.mxu3 }
 0x1cf   : > { %v2317_v34 = vadd.f32 %v2316_v32, %v2301_v4  ;;  %v2060_v8 = vadd.f32 %v2042_v44, %v1726_v38 }
 0x1d1   : > { %v2266_v14 = vadd.f32 %v2248_v59, %v2060_v8 }
 0x1d3   : > { %v2286_v63 = vadd.f32 %v3658_v3, %v2266_v14 }
 0x1d5   : > { %v2302_v45 = vmax.f32 %v2286_v63, 0.0 }
 0x1d7   : > { %v2318_v53 = vadd.f32 %v2317_v34, %v2302_v45 }
 0x1d9   : > { %v2319_v39 = vrot.slane %v2318_v53, 4 }
 0x1db   : > { %v2320_v9 = vadd.f32 %v2319_v39, %v2318_v53 }
 0x1dd   : > { %v2321_v10 = vrot.slane %v2320_v9, 2 }
 0x1df   : > { %v2322_v12 = vadd.f32 %v2321_v10, %v2320_v9 }
 0x1e1   : > { %v2323_v33 = vrot.slane %v2322_v12, 1 }
 0x1e3   : > { %v2324_v24 = vadd.f32 %v2323_v33, %v2322_v12 }
 0x1e5   : > { %v2325_v15 = vadd.f32 %v2324_v24, %v2303_v5 }
 0x1e7   : > { %2326 = vst [vmem:[%s2919_s22] sm:$0x1] %v2325_v15 }
 0x1e8 PF: > { %s13_s16 = sadd.s32 1, %s2860_s16   ;;  %s3714_s12 = smov %s2852_s14 }
 0x1e9   : > { %p10_p7 = scmp.ge.s32.totalorder %s13_s16, 6   ;;  %s3715_s13 = smov %s2856_s15 }
 0x1ea   : > { %s3716_s14 = smov %s3719_s17  ;;  %s3717_s15 = smov %s3723_s18 }
 0x1eb   :  { %12 = sbr.rel (!%p10_p7) target bundleno = 3 (0x3), region = 83 }

</bundles_post_ra>
